<compile_context>
chip_gen: v7x
topology: tpu7x:2x2x1
jax: 0.10.0
libtpu: 0.0.40
codegen_flags: <defaults>
</compile_context>

<pallas_src>
import math

import numpy as np
import jax
import jax.numpy as jnp
from jax.experimental import pallas as pl
from jax.experimental.pallas import tpu as pltpu


# ----------------------------------------------------------------------------
# Kernel
# ----------------------------------------------------------------------------
def _convnet_kernel(x_ref, t1_ref, b1_ref, t2_ref, b2_ref,
                    wf_ref, bf_ref, w3_ref, b3_ref, w4_ref, b4_ref,
                    out_ref):
    f32 = jnp.float32
    bf16 = jnp.bfloat16
    B = out_ref.shape[0]                      # images per grid step (multiple of 8)

    # ---- layout: (B, 28, 28) -> (28*B, 28) slab with row = h*B + b ----------
    # Single in-VMEM relayout replaces the old wrapper-side HBM transpose.
    xs = jnp.transpose(x_ref[...], (1, 0, 2)).astype(bf16).reshape(28 * B, 28)

    # ---- conv1 (1->6, k=3, valid) + bias + relu: ONE banded GEMM ------------
    # lhs row ho*B+b holds rows ho..ho+2 of image b concatenated along lanes.
    lhs1 = jnp.concatenate([xs[kh * B:(kh + 26) * B, :] for kh in range(3)],
                           axis=-1)                                    # (26B, 84)
    y1 = jnp.dot(lhs1, t1_ref[...], preferred_element_type=f32)       # (26B, 156)
    y1 = jnp.maximum(y1 + b1_ref[...], 0.0)
    # lane col of y1 = (wo % 2) * 78 + (wo // 2) * 6 + co  (even/odd permuted)

    # ---- maxpool 2x2/2: row pairs via free leading-dim reshape, cols via lanes
    y1 = y1.reshape(13, 2 * B, 156)
    h1 = jnp.maximum(y1[:, :B, :], y1[:, B:, :])                      # (13, B, 156)
    p1 = jnp.maximum(h1[..., 0:78], h1[..., 78:156])                  # (13, B, 78)
    p1 = p1.reshape(13 * B, 78).astype(bf16)                          # row = h*B+b, lane = w*6+c

    # ---- conv2 (6->32, k=3, valid) + bias + relu: ONE banded GEMM -----------
    lhs2 = jnp.concatenate([p1[kh * B:(kh + 11) * B, :] for kh in range(3)],
                           axis=-1)                                    # (11B, 234)
    y2 = jnp.dot(lhs2, t2_ref[...], preferred_element_type=f32)       # (11B, 352)
    y2 = jnp.maximum(y2 + b2_ref[...], 0.0)
    # lane col of y2 = (wo % 2) * 192 + (wo // 2) * 32 + co

    # ---- maxpool 2x2/2 (drops conv2's 11th row/column) ----------------------
    y2 = y2[:10 * B, :].reshape(5, 2 * B, 352)
    h2 = jnp.maximum(y2[:, :B, :], y2[:, B:, :])                      # (5, B, 352)
    p2 = jnp.maximum(h2[..., 0:160], h2[..., 192:352])                # (5, B, 160)
    p2 = p2.reshape(5 * B, 160).astype(bf16)                          # row = h*B+b, lane = w*32+c

    # ---- flatten linear: 5 accumulating GEMMs split over pooled rows --------
    wf = wf_ref[...]                                                   # (800, 128)
    acc = jnp.dot(p2[0:B], wf[0:160], preferred_element_type=f32)
    for h in range(1, 5):
        acc = acc + jnp.dot(p2[h * B:(h + 1) * B],
                            wf[h * 160:(h + 1) * 160],
                            preferred_element_type=f32)
    h3 = jnp.maximum(acc + bf_ref[...], 0.0).astype(bf16)              # (B, 128)

    # ---- fc1 / fc2 (fc2 zero-padded to 128 lanes for an unmasked store) -----
    h4 = jnp.maximum(jnp.dot(h3, w3_ref[...], preferred_element_type=f32)
                     + b3_ref[...], 0.0).astype(bf16)                  # (B, 64)
    out = jnp.dot(h4, w4_ref[...], preferred_element_type=f32) + b4_ref[...]
    out_ref[...] = out.astype(out_ref.dtype)                           # (B, 128)


# ----------------------------------------------------------------------------
# Wrapper: PyTorch-layout params -> kernel-layout params (banded conv matrices)
# ----------------------------------------------------------------------------
def _even_odd_perm(n):
    return np.concatenate([np.arange(0, n, 2), np.arange(1, n, 2)])


def to_kernel_params(tp):
    f32, bf16 = jnp.float32, jnp.bfloat16

    # conv1 -> banded matrix T1[kh*28 + wi, col(wo,co)] = w1[co, kh, wi-wo]
    w1 = np.asarray(tp["conv1_w"], np.float32)[:, 0]                 # (6,3,3) (co,kh,kw)
    s1 = np.zeros((3, 28, 26), np.float32)                           # (kw, wi, wo)
    for kw in range(3):
        for wo in range(26):
            s1[kw, wo + kw, wo] = 1.0
    t1 = np.einsum("kiw,chk->hiwc", s1, w1)                          # (3, 28, 26, 6)
    t1 = t1[:, :, _even_odd_perm(26), :].reshape(84, 156)
    b1 = np.tile(np.asarray(tp["conv1_b"], np.float32), 26)[None, :]  # (1, 156)

    # conv2 -> banded matrix T2[kh*78 + w_in*6 + ci, col(wo,co)] = w2[co, ci, kh, w_in-wo]
    w2 = np.asarray(tp["conv2_w"], np.float32)                       # (32,6,3,3) (co,ci,kh,kw)
    s2 = np.zeros((3, 13, 11), np.float32)                           # (kw, w_in, wo)
    for kw in range(3):
        for wo in range(11):
            s2[kw, wo + kw, wo] = 1.0
    t2 = np.einsum("kiw,ochk->hicwo", s2, w2)                        # (3, 13, 6, 11, 32)
    t2 = t2.reshape(3, 78, 11, 32)[:, :, _even_odd_perm(11), :].reshape(234, 352)
    b2 = np.tile(np.asarray(tp["conv2_b"], np.float32), 11)[None, :]  # (1, 352)

    # flatten: kernel K order is (h, w, c); torch column index is c*25 + h*5 + w
    wf = np.transpose(np.asarray(tp["flat_w"], np.float32).reshape(128, 32, 5, 5),
                      (2, 3, 1, 0)).reshape(800, 128)
    bf_ = np.asarray(tp["flat_b"], np.float32)[None, :]
    w3 = np.asarray(tp["fc1_w"], np.float32).T                        # (128, 64)
    b3 = np.asarray(tp["fc1_b"], np.float32)[None, :]
    # fc2 zero-padded from 10 to 128 output lanes (lane-dense final store)
    w4 = np.zeros((64, 128), np.float32)
    w4[:, :10] = np.asarray(tp["fc2_w"], np.float32).T
    b4 = np.zeros((1, 128), np.float32)
    b4[0, :10] = np.asarray(tp["fc2_b"], np.float32)

    return (jnp.asarray(t1, bf16), jnp.asarray(b1, f32),
            jnp.asarray(t2, bf16), jnp.asarray(b2, f32),
            jnp.asarray(wf, bf16), jnp.asarray(bf_, f32),
            jnp.asarray(w3, bf16), jnp.asarray(b3, f32),
            jnp.asarray(w4, bf16), jnp.asarray(b4, f32))


def convnet_forward(x_nchw, kparams, *, block_b=None):
    weights = kparams
    n = x_nchw.shape[0]
    if block_b is None:
        # sublane-aligned batch tile; capped at 128 (~6-8 MiB live VMEM), and
        # sized so medium batches produce >=2 grid steps (v7x has 2 TensorCores).
        block_b = max(8, min(128, 8 * pl.cdiv(n, 16)))
    n_blocks = pl.cdiv(n, block_b)
    n_pad = n_blocks * block_b

    x = x_nchw.astype(jnp.float32).reshape(n, 28, 28)     # free squeeze of C=1
    if n_pad != n:
        x = jnp.pad(x, ((0, n_pad - n), (0, 0), (0, 0)))

    def const_spec(a):
        zeros = (0,) * a.ndim
        return pl.BlockSpec(a.shape, lambda i, z=zeros: z)   # resident weights

    grid_spec = pltpu.PrefetchScalarGridSpec(
        num_scalar_prefetch=0,
        grid=(n_blocks,),
        in_specs=[pl.BlockSpec((block_b, 28, 28), lambda i: (i, 0, 0))]
                 + [const_spec(w) for w in weights],
        out_specs=pl.BlockSpec((block_b, 128), lambda i: (i, 0)),
    )

    # MXU flops actually executed per image (banded-GEMM form).
    mxu_flops_per_img = 2 * (26 * 84 * 156 + 11 * 234 * 352
                             + 800 * 128 + 128 * 64 + 64 * 128)
    cost = pl.CostEstimate(
        flops=int(mxu_flops_per_img * n_pad),
        transcendentals=0,
        bytes_accessed=int(4 * x.size
                           + sum(int(w.size) * w.dtype.itemsize for w in weights)
                           + 4 * n_pad * 128),
    )

    out = pl.pallas_call(
        _convnet_kernel,
        out_shape=jax.ShapeDtypeStruct((n_pad, 128), jnp.float32),
        grid_spec=grid_spec,
        compiler_params=pltpu.CompilerParams(
            dimension_semantics=("parallel",)),
        cost_estimate=cost,
    )(x, *weights)
    return out[:n, :10]


# ----------------------------------------------------------------------------
# Deterministic torch-layout params + pure-JAX reference
# ----------------------------------------------------------------------------
def init_torch_params(key):
    ks = jax.random.split(key, 10)

    def u(k, shape, fan_in):
        bound = 1.0 / math.sqrt(fan_in)
        return jax.random.uniform(k, shape, jnp.float32, -bound, bound)

    return dict(
        conv1_w=u(ks[0], (6, 1, 3, 3), 9),     conv1_b=u(ks[1], (6,), 9),
        conv2_w=u(ks[2], (32, 6, 3, 3), 54),   conv2_b=u(ks[3], (32,), 54),
        flat_w=u(ks[4], (128, 800), 800),      flat_b=u(ks[5], (128,), 800),
        fc1_w=u(ks[6], (64, 128), 128),        fc1_b=u(ks[7], (64,), 128),
        fc2_w=u(ks[8], (10, 64), 64),          fc2_b=u(ks[9], (10,), 64),
    )


def ref_forward(x, tp):
    """Pure-JAX reference matching the PyTorch forward exactly (f32, HIGHEST)."""
    hp = jax.lax.Precision.HIGHEST
    y = jax.lax.conv_general_dilated(
        x, tp["conv1_w"], (1, 1), "VALID",
        dimension_numbers=("NCHW", "OIHW", "NCHW"), precision=hp)
    y = jnp.maximum(y + tp["conv1_b"][None, :, None, None], 0.0)
    y = jax.lax.reduce_window(y, -jnp.inf, jax.lax.max,
                              (1, 1, 2, 2), (1, 1, 2, 2), "VALID")
    y = jax.lax.conv_general_dilated(
        y, tp["conv2_w"], (1, 1), "VALID",
        dimension_numbers=("NCHW", "OIHW", "NCHW"), precision=hp)
    y = jnp.maximum(y + tp["conv2_b"][None, :, None, None], 0.0)
    y = jax.lax.reduce_window(y, -jnp.inf, jax.lax.max,
                              (1, 1, 2, 2), (1, 1, 2, 2), "VALID")
    y = y.reshape(y.shape[0], -1)                               # CHW flatten
    y = jnp.maximum(jnp.dot(y, tp["flat_w"].T, precision=hp) + tp["flat_b"], 0.0)
    y = jnp.maximum(jnp.dot(y, tp["fc1_w"].T, precision=hp) + tp["fc1_b"], 0.0)
    y = jnp.dot(y, tp["fc2_w"].T, precision=hp) + tp["fc2_b"]
    return y


if __name__ == "__main__":
    key = jax.random.PRNGKey(0)
    pkey, xkey = jax.random.split(key)
    torch_params = init_torch_params(pkey)
    kernel_params = to_kernel_params(torch_params)

    # batch=2, MNIST-sized input (28x28 is required by the 32*5*5 flatten).
    x = jax.random.normal(xkey, (2, 1, 28, 28), jnp.float32)    # NCHW

    out = jax.block_until_ready(convnet_forward(x, kernel_params))
    assert out.shape == (2, 10), out.shape

    ref = jax.block_until_ready(ref_forward(x, torch_params))
    # tolerance covers bf16 GEMM inputs (f32 accumulation) vs f32 HIGHEST reference
    if not jnp.allclose(out, ref, atol=3e-2, rtol=3e-2):
        raise AssertionError(
            f"mismatch vs reference, max abs diff {float(jnp.max(jnp.abs(out - ref)))}")

    print("KERNEL_OK")
</pallas_src>

<mosaic_0001>
module attributes {stable_mosaic.version = 11 : i64} {
  func.func @_convnet_kernel(%arg0: i32, %arg1: memref<8x28x28xf32, #tpu.memory_space<vmem>>, %arg2: memref<84x156xbf16, #tpu.memory_space<vmem>>, %arg3: memref<1x156xf32, #tpu.memory_space<vmem>>, %arg4: memref<234x352xbf16, #tpu.memory_space<vmem>>, %arg5: memref<1x352xf32, #tpu.memory_space<vmem>>, %arg6: memref<800x128xbf16, #tpu.memory_space<vmem>>, %arg7: memref<1x128xf32, #tpu.memory_space<vmem>>, %arg8: memref<128x64xbf16, #tpu.memory_space<vmem>>, %arg9: memref<1x64xf32, #tpu.memory_space<vmem>>, %arg10: memref<64x128xbf16, #tpu.memory_space<vmem>>, %arg11: memref<1x128xf32, #tpu.memory_space<vmem>>, %arg12: memref<8x128xf32, #tpu.memory_space<vmem>>) attributes {dimension_semantics = [#tpu.dimension_semantics<parallel>], iteration_bounds = array<i64: 1>, scalar_prefetch = 0 : i64, scratch_operands = 0 : i64, tpu.core_type = #tpu.core_type<tc>, window_params = [{transform_indices = @transform_0, window_bounds = array<i64: 8, 28, 28>}, {pipeline_mode = #tpu.pipeline_mode<synchronous>, transform_indices = @transform_1, window_bounds = array<i64: 84, 156>}, {pipeline_mode = #tpu.pipeline_mode<synchronous>, transform_indices = @transform_2, window_bounds = array<i64: 1, 156>}, {pipeline_mode = #tpu.pipeline_mode<synchronous>, transform_indices = @transform_3, window_bounds = array<i64: 234, 352>}, {pipeline_mode = #tpu.pipeline_mode<synchronous>, transform_indices = @transform_4, window_bounds = array<i64: 1, 352>}, {pipeline_mode = #tpu.pipeline_mode<synchronous>, transform_indices = @transform_5, window_bounds = array<i64: 800, 128>}, {pipeline_mode = #tpu.pipeline_mode<synchronous>, transform_indices = @transform_6, window_bounds = array<i64: 1, 128>}, {pipeline_mode = #tpu.pipeline_mode<synchronous>, transform_indices = @transform_7, window_bounds = array<i64: 128, 64>}, {pipeline_mode = #tpu.pipeline_mode<synchronous>, transform_indices = @transform_8, window_bounds = array<i64: 1, 64>}, {pipeline_mode = #tpu.pipeline_mode<synchronous>, transform_indices = @transform_9, window_bounds = array<i64: 64, 128>}, {pipeline_mode = #tpu.pipeline_mode<synchronous>, transform_indices = @transform_10, window_bounds = array<i64: 1, 128>}, {transform_indices = @transform_11, window_bounds = array<i64: 8, 128>}]} {
    %c0 = arith.constant 0 : index
    %c0_0 = arith.constant 0 : index
    %c0_1 = arith.constant 0 : index
    %0 = vector.load %arg1[%c0, %c0_0, %c0_1] : memref<8x28x28xf32, #tpu.memory_space<vmem>>, vector<8x28x28xf32>
    %1 = tpu.transpose %0, [1, 0, 2] : vector<8x28x28xf32> -> vector<28x8x28xf32>
    %2 = arith.truncf %1 : vector<28x8x28xf32> to vector<28x8x28xbf16>
    %3 = vector.shape_cast %2 : vector<28x8x28xbf16> to vector<224x28xbf16>
    %4 = vector.extract_strided_slice %3 {offsets = [0, 0], sizes = [208, 28], strides = [1, 1]} : vector<224x28xbf16> to vector<208x28xbf16>
    %5 = vector.extract_strided_slice %3 {offsets = [8, 0], sizes = [208, 28], strides = [1, 1]} : vector<224x28xbf16> to vector<208x28xbf16>
    %6 = vector.extract_strided_slice %3 {offsets = [16, 0], sizes = [208, 28], strides = [1, 1]} : vector<224x28xbf16> to vector<208x28xbf16>
    %7 = tpu.concatenate %4, %5, %6 in 1 : vector<208x28xbf16>, vector<208x28xbf16>, vector<208x28xbf16> -> vector<208x84xbf16>
    %c0_2 = arith.constant 0 : index
    %c0_3 = arith.constant 0 : index
    %8 = vector.load %arg2[%c0_2, %c0_3] : memref<84x156xbf16, #tpu.memory_space<vmem>>, vector<84x156xbf16>
    %cst = arith.constant dense<0.000000e+00> : vector<208x156xf32>
    %9 = tpu.matmul %7, %8, %cst {dimension_numbers = #tpu.dot_dimension_numbers<[1], [0], [0], [1], [0, 0, 1, 1], [], []>} : vector<208x84xbf16>, vector<84x156xbf16>, vector<208x156xf32> -> vector<208x156xf32>
    %c0_4 = arith.constant 0 : index
    %c0_5 = arith.constant 0 : index
    %10 = vector.load %arg3[%c0_4, %c0_5] : memref<1x156xf32, #tpu.memory_space<vmem>>, vector<1x156xf32>
    %11 = vector.broadcast %10 : vector<1x156xf32> to vector<208x156xf32>
    %12 = arith.addf %9, %11 : vector<208x156xf32>
    %cst_6 = arith.constant 0.000000e+00 : f32
    %13 = vector.broadcast %cst_6 : f32 to vector<208x156xf32>
    %14 = arith.maximumf %12, %13 : vector<208x156xf32>
    %15 = vector.shape_cast %14 : vector<208x156xf32> to vector<13x16x156xf32>
    %16 = vector.extract_strided_slice %15 {offsets = [0, 0, 0], sizes = [13, 8, 156], strides = [1, 1, 1]} : vector<13x16x156xf32> to vector<13x8x156xf32>
    %17 = vector.extract_strided_slice %15 {offsets = [0, 8, 0], sizes = [13, 8, 156], strides = [1, 1, 1]} : vector<13x16x156xf32> to vector<13x8x156xf32>
    %18 = arith.maximumf %16, %17 : vector<13x8x156xf32>
    %19 = vector.extract_strided_slice %18 {offsets = [0, 0, 0], sizes = [13, 8, 78], strides = [1, 1, 1]} : vector<13x8x156xf32> to vector<13x8x78xf32>
    %20 = vector.extract_strided_slice %18 {offsets = [0, 0, 78], sizes = [13, 8, 78], strides = [1, 1, 1]} : vector<13x8x156xf32> to vector<13x8x78xf32>
    %21 = arith.maximumf %19, %20 : vector<13x8x78xf32>
    %22 = vector.shape_cast %21 : vector<13x8x78xf32> to vector<104x78xf32>
    %23 = arith.truncf %22 : vector<104x78xf32> to vector<104x78xbf16>
    %24 = vector.extract_strided_slice %23 {offsets = [0, 0], sizes = [88, 78], strides = [1, 1]} : vector<104x78xbf16> to vector<88x78xbf16>
    %25 = vector.extract_strided_slice %23 {offsets = [8, 0], sizes = [88, 78], strides = [1, 1]} : vector<104x78xbf16> to vector<88x78xbf16>
    %26 = vector.extract_strided_slice %23 {offsets = [16, 0], sizes = [88, 78], strides = [1, 1]} : vector<104x78xbf16> to vector<88x78xbf16>
    %27 = tpu.concatenate %24, %25, %26 in 1 : vector<88x78xbf16>, vector<88x78xbf16>, vector<88x78xbf16> -> vector<88x234xbf16>
    %c0_7 = arith.constant 0 : index
    %c0_8 = arith.constant 0 : index
    %28 = vector.load %arg4[%c0_7, %c0_8] : memref<234x352xbf16, #tpu.memory_space<vmem>>, vector<234x352xbf16>
    %cst_9 = arith.constant dense<0.000000e+00> : vector<88x352xf32>
    %29 = tpu.matmul %27, %28, %cst_9 {dimension_numbers = #tpu.dot_dimension_numbers<[1], [0], [0], [1], [0, 0, 1, 1], [], []>} : vector<88x234xbf16>, vector<234x352xbf16>, vector<88x352xf32> -> vector<88x352xf32>
    %c0_10 = arith.constant 0 : index
    %c0_11 = arith.constant 0 : index
    %30 = vector.load %arg5[%c0_10, %c0_11] : memref<1x352xf32, #tpu.memory_space<vmem>>, vector<1x352xf32>
    %31 = vector.broadcast %30 : vector<1x352xf32> to vector<88x352xf32>
    %32 = arith.addf %29, %31 : vector<88x352xf32>
    %cst_12 = arith.constant 0.000000e+00 : f32
    %33 = vector.broadcast %cst_12 : f32 to vector<88x352xf32>
    %34 = arith.maximumf %32, %33 : vector<88x352xf32>
    %35 = vector.extract_strided_slice %34 {offsets = [0, 0], sizes = [80, 352], strides = [1, 1]} : vector<88x352xf32> to vector<80x352xf32>
    %36 = vector.shape_cast %35 : vector<80x352xf32> to vector<5x16x352xf32>
    %37 = vector.extract_strided_slice %36 {offsets = [0, 0, 0], sizes = [5, 8, 352], strides = [1, 1, 1]} : vector<5x16x352xf32> to vector<5x8x352xf32>
    %38 = vector.extract_strided_slice %36 {offsets = [0, 8, 0], sizes = [5, 8, 352], strides = [1, 1, 1]} : vector<5x16x352xf32> to vector<5x8x352xf32>
    %39 = arith.maximumf %37, %38 : vector<5x8x352xf32>
    %40 = vector.extract_strided_slice %39 {offsets = [0, 0, 0], sizes = [5, 8, 160], strides = [1, 1, 1]} : vector<5x8x352xf32> to vector<5x8x160xf32>
    %41 = vector.extract_strided_slice %39 {offsets = [0, 0, 192], sizes = [5, 8, 160], strides = [1, 1, 1]} : vector<5x8x352xf32> to vector<5x8x160xf32>
    %42 = arith.maximumf %40, %41 : vector<5x8x160xf32>
    %43 = vector.shape_cast %42 : vector<5x8x160xf32> to vector<40x160xf32>
    %44 = arith.truncf %43 : vector<40x160xf32> to vector<40x160xbf16>
    %c0_13 = arith.constant 0 : index
    %c0_14 = arith.constant 0 : index
    %45 = vector.load %arg6[%c0_13, %c0_14] : memref<800x128xbf16, #tpu.memory_space<vmem>>, vector<800x128xbf16>
    %46 = vector.extract_strided_slice %44 {offsets = [0, 0], sizes = [8, 160], strides = [1, 1]} : vector<40x160xbf16> to vector<8x160xbf16>
    %47 = vector.extract_strided_slice %45 {offsets = [0, 0], sizes = [160, 128], strides = [1, 1]} : vector<800x128xbf16> to vector<160x128xbf16>
    %cst_15 = arith.constant dense<0.000000e+00> : vector<8x128xf32>
    %48 = tpu.matmul %46, %47, %cst_15 {dimension_numbers = #tpu.dot_dimension_numbers<[1], [0], [0], [1], [0, 0, 1, 1], [], []>} : vector<8x160xbf16>, vector<160x128xbf16>, vector<8x128xf32> -> vector<8x128xf32>
    %49 = vector.extract_strided_slice %44 {offsets = [8, 0], sizes = [8, 160], strides = [1, 1]} : vector<40x160xbf16> to vector<8x160xbf16>
    %50 = vector.extract_strided_slice %45 {offsets = [160, 0], sizes = [160, 128], strides = [1, 1]} : vector<800x128xbf16> to vector<160x128xbf16>
    %cst_16 = arith.constant dense<0.000000e+00> : vector<8x128xf32>
    %51 = tpu.matmul %49, %50, %cst_16 {dimension_numbers = #tpu.dot_dimension_numbers<[1], [0], [0], [1], [0, 0, 1, 1], [], []>} : vector<8x160xbf16>, vector<160x128xbf16>, vector<8x128xf32> -> vector<8x128xf32>
    %52 = arith.addf %48, %51 : vector<8x128xf32>
    %53 = vector.extract_strided_slice %44 {offsets = [16, 0], sizes = [8, 160], strides = [1, 1]} : vector<40x160xbf16> to vector<8x160xbf16>
    %54 = vector.extract_strided_slice %45 {offsets = [320, 0], sizes = [160, 128], strides = [1, 1]} : vector<800x128xbf16> to vector<160x128xbf16>
    %cst_17 = arith.constant dense<0.000000e+00> : vector<8x128xf32>
    %55 = tpu.matmul %53, %54, %cst_17 {dimension_numbers = #tpu.dot_dimension_numbers<[1], [0], [0], [1], [0, 0, 1, 1], [], []>} : vector<8x160xbf16>, vector<160x128xbf16>, vector<8x128xf32> -> vector<8x128xf32>
    %56 = arith.addf %52, %55 : vector<8x128xf32>
    %57 = vector.extract_strided_slice %44 {offsets = [24, 0], sizes = [8, 160], strides = [1, 1]} : vector<40x160xbf16> to vector<8x160xbf16>
    %58 = vector.extract_strided_slice %45 {offsets = [480, 0], sizes = [160, 128], strides = [1, 1]} : vector<800x128xbf16> to vector<160x128xbf16>
    %cst_18 = arith.constant dense<0.000000e+00> : vector<8x128xf32>
    %59 = tpu.matmul %57, %58, %cst_18 {dimension_numbers = #tpu.dot_dimension_numbers<[1], [0], [0], [1], [0, 0, 1, 1], [], []>} : vector<8x160xbf16>, vector<160x128xbf16>, vector<8x128xf32> -> vector<8x128xf32>
    %60 = arith.addf %56, %59 : vector<8x128xf32>
    %61 = vector.extract_strided_slice %44 {offsets = [32, 0], sizes = [8, 160], strides = [1, 1]} : vector<40x160xbf16> to vector<8x160xbf16>
    %62 = vector.extract_strided_slice %45 {offsets = [640, 0], sizes = [160, 128], strides = [1, 1]} : vector<800x128xbf16> to vector<160x128xbf16>
    %cst_19 = arith.constant dense<0.000000e+00> : vector<8x128xf32>
    %63 = tpu.matmul %61, %62, %cst_19 {dimension_numbers = #tpu.dot_dimension_numbers<[1], [0], [0], [1], [0, 0, 1, 1], [], []>} : vector<8x160xbf16>, vector<160x128xbf16>, vector<8x128xf32> -> vector<8x128xf32>
    %64 = arith.addf %60, %63 : vector<8x128xf32>
    %c0_20 = arith.constant 0 : index
    %c0_21 = arith.constant 0 : index
    %65 = vector.load %arg7[%c0_20, %c0_21] : memref<1x128xf32, #tpu.memory_space<vmem>>, vector<1x128xf32>
    %66 = vector.broadcast %65 : vector<1x128xf32> to vector<8x128xf32>
    %67 = arith.addf %64, %66 : vector<8x128xf32>
    %cst_22 = arith.constant 0.000000e+00 : f32
    %68 = vector.broadcast %cst_22 : f32 to vector<8x128xf32>
    %69 = arith.maximumf %67, %68 : vector<8x128xf32>
    %70 = arith.truncf %69 : vector<8x128xf32> to vector<8x128xbf16>
    %c0_23 = arith.constant 0 : index
    %c0_24 = arith.constant 0 : index
    %71 = vector.load %arg8[%c0_23, %c0_24] : memref<128x64xbf16, #tpu.memory_space<vmem>>, vector<128x64xbf16>
    %cst_25 = arith.constant dense<0.000000e+00> : vector<8x64xf32>
    %72 = tpu.matmul %70, %71, %cst_25 {dimension_numbers = #tpu.dot_dimension_numbers<[1], [0], [0], [1], [0, 0, 1, 1], [], []>} : vector<8x128xbf16>, vector<128x64xbf16>, vector<8x64xf32> -> vector<8x64xf32>
    %c0_26 = arith.constant 0 : index
    %c0_27 = arith.constant 0 : index
    %73 = vector.load %arg9[%c0_26, %c0_27] : memref<1x64xf32, #tpu.memory_space<vmem>>, vector<1x64xf32>
    %74 = vector.broadcast %73 : vector<1x64xf32> to vector<8x64xf32>
    %75 = arith.addf %72, %74 : vector<8x64xf32>
    %cst_28 = arith.constant 0.000000e+00 : f32
    %76 = vector.broadcast %cst_28 : f32 to vector<8x64xf32>
    %77 = arith.maximumf %75, %76 : vector<8x64xf32>
    %78 = arith.truncf %77 : vector<8x64xf32> to vector<8x64xbf16>
    %c0_29 = arith.constant 0 : index
    %c0_30 = arith.constant 0 : index
    %79 = vector.load %arg10[%c0_29, %c0_30] : memref<64x128xbf16, #tpu.memory_space<vmem>>, vector<64x128xbf16>
    %cst_31 = arith.constant dense<0.000000e+00> : vector<8x128xf32>
    %80 = tpu.matmul %78, %79, %cst_31 {dimension_numbers = #tpu.dot_dimension_numbers<[1], [0], [0], [1], [0, 0, 1, 1], [], []>} : vector<8x64xbf16>, vector<64x128xbf16>, vector<8x128xf32> -> vector<8x128xf32>
    %c0_32 = arith.constant 0 : index
    %c0_33 = arith.constant 0 : index
    %81 = vector.load %arg11[%c0_32, %c0_33] : memref<1x128xf32, #tpu.memory_space<vmem>>, vector<1x128xf32>
    %82 = vector.broadcast %81 : vector<1x128xf32> to vector<8x128xf32>
    %83 = arith.addf %80, %82 : vector<8x128xf32>
    %c0_34 = arith.constant 0 : index
    %c0_35 = arith.constant 0 : index
    %84 = vector.load %arg12[%c0_34, %c0_35] : memref<8x128xf32, #tpu.memory_space<vmem>>, vector<8x128xf32>
    tpu.vector_store %arg12[%c0_34, %c0_35], %83 {strides = array<i32>} : memref<8x128xf32, #tpu.memory_space<vmem>>, vector<8x128xf32>,
    return
  }
  func.func @transform_0(%arg0: i32) -> (i32, i32, i32) {
    %c0_i32 = arith.constant 0 : i32
    %c0_i32_0 = arith.constant 0 : i32
    %c0_i32_1 = arith.constant 0 : i32
    return %arg0, %c0_i32, %c0_i32_0 : i32, i32, i32
  }
  func.func @transform_1(%arg0: i32) -> (i32, i32) {
    %c0_i32 = arith.constant 0 : i32
    %c0_i32_0 = arith.constant 0 : i32
    %c0_i32_1 = arith.constant 0 : i32
    return %c0_i32, %c0_i32_0 : i32, i32
  }
  func.func @transform_2(%arg0: i32) -> (i32, i32) {
    %c0_i32 = arith.constant 0 : i32
    %c0_i32_0 = arith.constant 0 : i32
    %c0_i32_1 = arith.constant 0 : i32
    return %c0_i32, %c0_i32_0 : i32, i32
  }
  func.func @transform_3(%arg0: i32) -> (i32, i32) {
    %c0_i32 = arith.constant 0 : i32
    %c0_i32_0 = arith.constant 0 : i32
    %c0_i32_1 = arith.constant 0 : i32
    return %c0_i32, %c0_i32_0 : i32, i32
  }
  func.func @transform_4(%arg0: i32) -> (i32, i32) {
    %c0_i32 = arith.constant 0 : i32
    %c0_i32_0 = arith.constant 0 : i32
    %c0_i32_1 = arith.constant 0 : i32
    return %c0_i32, %c0_i32_0 : i32, i32
  }
  func.func @transform_5(%arg0: i32) -> (i32, i32) {
    %c0_i32 = arith.constant 0 : i32
    %c0_i32_0 = arith.constant 0 : i32
    %c0_i32_1 = arith.constant 0 : i32
    return %c0_i32, %c0_i32_0 : i32, i32
  }
  func.func @transform_6(%arg0: i32) -> (i32, i32) {
    %c0_i32 = arith.constant 0 : i32
    %c0_i32_0 = arith.constant 0 : i32
    %c0_i32_1 = arith.constant 0 : i32
    return %c0_i32, %c0_i32_0 : i32, i32
  }
  func.func @transform_7(%arg0: i32) -> (i32, i32) {
    %c0_i32 = arith.constant 0 : i32
    %c0_i32_0 = arith.constant 0 : i32
    %c0_i32_1 = arith.constant 0 : i32
    return %c0_i32, %c0_i32_0 : i32, i32
  }
  func.func @transform_8(%arg0: i32) -> (i32, i32) {
    %c0_i32 = arith.constant 0 : i32
    %c0_i32_0 = arith.constant 0 : i32
    %c0_i32_1 = arith.constant 0 : i32
    return %c0_i32, %c0_i32_0 : i32, i32
  }
  func.func @transform_9(%arg0: i32) -> (i32, i32) {
    %c0_i32 = arith.constant 0 : i32
    %c0_i32_0 = arith.constant 0 : i32
    %c0_i32_1 = arith.constant 0 : i32
    return %c0_i32, %c0_i32_0 : i32, i32
  }
  func.func @transform_10(%arg0: i32) -> (i32, i32) {
    %c0_i32 = arith.constant 0 : i32
    %c0_i32_0 = arith.constant 0 : i32
    %c0_i32_1 = arith.constant 0 : i32
    return %c0_i32, %c0_i32_0 : i32, i32
  }
  func.func @transform_11(%arg0: i32) -> (i32, i32) {
    %c0_i32 = arith.constant 0 : i32
    %c0_i32_0 = arith.constant 0 : i32
    return %arg0, %c0_i32 : i32, i32
  }
}

</mosaic_0001>

<bundles_post_ra>
// kernel: tpu_custom_call.1
= control target key start
LH: loop header
LB: loop body
LE: loop exit
PB: predicated region body
PF: predicated region fallthrough
CT: control target
= control target key end

     0   :  { %v77_v3 = vlaneseq  ;;  %v3316_v8 = vmov 1983009808   ;;  %v3317_v14 = vmov 1934713408   ;;  %s3318_s21 = smov 28   ;;  %s3319_s30 = smov 56   ;;  %s4522_s0 = inlined_call_operand.vmem [shape: f32[8,28,28], index: 0, kind: input, shape index: {}]   ;;  %s4523_s1 = inlined_call_operand.vmem [shape: bf16[84,156], index: 1, kind: input, shape index: {}]   ;;  %s4524_s2 = inlined_call_operand.vmem [shape: f32[1,156], index: 2, kind: input, shape index: {}]   ;;  %s4525_s3 = inlined_call_operand.vmem [shape: bf16[234,352], index: 3, kind: input, shape index: {}]   ;;  %s4526_s4 = inlined_call_operand.vmem [shape: f32[1,352], index: 4, kind: input, shape index: {}]   ;;  %s4527_s5 = inlined_call_operand.vmem [shape: bf16[800,128], index: 5, kind: input, shape index: {}]   ;;  %s4528_s6 = inlined_call_operand.vmem [shape: f32[1,128], index: 6, kind: input, shape index: {}]   ;;  %s4529_s7 = inlined_call_operand.vmem [shape: bf16[128,64], index: 7, kind: input, shape index: {}]   ;;  %s4530_s8 = inlined_call_operand.vmem [shape: f32[1,64], index: 8, kind: input, shape index: {}]   ;;  %s4531_s9 = inlined_call_operand.vmem [shape: bf16[64,128], index: 9, kind: input, shape index: {}]   ;;  %s4532_s10 = inlined_call_operand.vmem [shape: f32[1,128], index: 10, kind: input, shape index: {}]   ;;  %s4533_s11 = inlined_call_operand.hbm [shape: f32[8,128], index: 11, kind: output, shape index: {}]  }
   0x1   :  { %v40_v0 = vld [vmem:[%s4522_s0] sm:$0xff]  ;;  %v75_v9 = vunpack.c.l.s4 %v3316_v8  ;;  %v139_v15 = vunpack.c.l.s4 %v3317_v14  ;;  %v3416_v17 = vld [vmem:[%s4522_s0 + $0x8] sm:$0xff]  ;;  %vm883_vm0 = vcmask 1041408  }
   0x2   :  { %v44_v1 = vld [vmem:[%s4522_s0 + $0x20] sm:$0xff]  ;;  %v3411_v12 = vshrl.u32 %v77_v3, 7  ;;  %v3421_v22 = vld [vmem:[%s4522_s0 + $0x28] sm:$0xff]  ;;  %v3156_v3 = vld [vmem:[%s4523_s1 + $0x14] ss:$8 sps:$4 sm:$0xff]  }
   0x3   :  { %v48_v2 = vld [vmem:[%s4522_s0 + $0x40] sm:$0xff]  ;;  %v76_v18 = vunpack.c.0.s8 %v75_v9  ;;  %v3426_v23 = vld [vmem:[%s4522_s0 + $0x48] sm:$0xff]  ;;  %v140_v25 = vunpack.c.0.s8 %v139_v15 }
   0x4   :  { %v52_v4 = vld [vmem:[%s4522_s0 + $0x60] sm:$0xff]  ;;  %v72_v7 = vcombine.low %v40_v0, %v48_v2  ;;  %v73_v16 = vcombine.high %v40_v0, %v48_v2  ;;  %v3431_v24 = vld [vmem:[%s4522_s0 + $0x68] sm:$0xff]  ;;  %v208_v31 = vcombine.low %v3416_v17, %v3426_v23  ;;  %v209_v36 = vcombine.high %v3416_v17, %v3426_v23 }
   0x5   :  { %v56_v5 = vld [vmem:[%s4522_s0 + $0x80] sm:$0xff]  ;;  %v88_v13 = vcombine.low %v44_v1, %v52_v4  ;;  %v89_v21 = vcombine.high %v44_v1, %v52_v4  ;;  %v3436_v28 = vld [vmem:[%s4522_s0 + $0x88] sm:$0xff]  ;;  %v3451_v32 = vsub.s32 %v76_v18, %v3411_v12  ;;  %v224_v34 = vcombine.low %v3421_v22, %v3431_v24 }
   0x6   :  { %v60_v6 = vld [vmem:[%s4522_s0 + $0xa0] sm:$0xff]  ;;  %v3441_v29 = vld [vmem:[%s4522_s0 + $0xa8] sm:$0xff]  ;;  %v3465_v37 = vsub.s32 %v140_v25, %v3411_v12  ;;  %v225_v39 = vcombine.high %v3421_v22, %v3431_v24 }
   0x7   :  { %v64_v10 = vld [vmem:[%s4522_s0 + $0xc0] sm:$0xff]  ;;  %v3446_v30 = vld [vmem:[%s4522_s0 + $0xc8] sm:$0xff]  ;;  %v80_v41 = vrot.slane %v72_v7, %v3451_v32  ;;  %v96_v42 = vrot.slane %v88_v13, %v3451_v32  ;;  %v87_v45 = vrot.slane %v73_v16, %v3451_v32  ;;  %v103_v46 = vrot.slane %v89_v21, %v3451_v32  ;;  %v3158_v16 = vld [vmem:[%s4523_s1 + $0x10] ss:$8 sps:$4 sm:$0xff]  }
   0x8   :  { %v68_v11 = vld [vmem:[%s4522_s0 + $0xe0] sm:$0xff]  ;;  %v104_v19 = vcombine.low %v56_v5, %v64_v10  ;;  %v105_v26 = vcombine.high %v56_v5, %v64_v10  ;;  %v3456_v33 = vld [vmem:[%s4522_s0 + $0xe8] sm:$0xff]  ;;  %v240_v35 = vcombine.low %v3436_v28, %v3446_v30  ;;  %v241_v40 = vcombine.high %v3436_v28, %v3446_v30 }
   0x9   :  { %v120_v20 = vcombine.low %v60_v6, %v68_v11  ;;  %v121_v27 = vcombine.high %v60_v6, %v68_v11  ;;  %v256_v38 = vcombine.low %v3441_v29, %v3456_v33  ;;  %v136_v49 = vcombine.low %v80_v41, %v96_v42  ;;  %v3153_v61 = vld [vmem:[%s4523_s1 + $0x4] ss:$8 sps:$4 sm:$0xff]   ;;  %v3155_v62 = vld [vmem:[%s4523_s1] ss:$8 sps:$4 sm:$0xff]  }
   0xa   :  { %v112_v43 = vrot.slane %v104_v19, %v3451_v32  ;;  %v119_v47 = vrot.slane %v105_v26, %v3451_v32  ;;  %v137_v50 = vcombine.high %v80_v41, %v96_v42  ;;  %v152_v53 = vcombine.low %v87_v45, %v103_v46  ;;  %890 = vmatprep.subr.bf16.mxu0 %v3153_v61  ;;  %v3159_v21 = vld [vmem:[%s4523_s1 + $0x24] ss:$8 sps:$4 sm:$0xff]   ;;  %v3161_v26 = vld [vmem:[%s4523_s1 + $0x20] ss:$8 sps:$4 sm:$0xff]  }
   0xb   :  { %v128_v44 = vrot.slane %v120_v20, %v3451_v32  ;;  %v135_v48 = vrot.slane %v121_v27, %v3451_v32  ;;  %v153_v55 = vcombine.high %v87_v45, %v103_v46  ;;  %v144_v57 = vrot.slane %v136_v49, %v3465_v37  ;;  %891 = vmatpush1.bf16.msra.mxu0 %v3155_v62 }
   0xc   :  { %v151_v58 = vrot.slane %v137_v50, %v3465_v37  ;;  %v160_v63 = vrot.slane %v152_v53, %v3465_v37  ;;  %v257_v11 = vcombine.high %v3441_v29, %v3456_v33  ;;  %v216_v15 = vrot.slane %v208_v31, %v3451_v32  ;;  %892 = vmatprep.subr.bf16.mxu0 %v3156_v3  ;;  %v3534_v31 = vld [vmem:[%s4522_s0 + $0x10] sm:$0xff]  ;;  %v3167_v3 = vld [vmem:[%s4523_s1 + $0x40] ss:$8 sps:$4 sm:$0xff]  }
   0xd   :  { %v168_v51 = vcombine.low %v112_v43, %v128_v44  ;;  %v169_v52 = vcombine.high %v112_v43, %v128_v44  ;;  %v184_v54 = vcombine.low %v119_v47, %v135_v48  ;;  %v185_v56 = vcombine.high %v119_v47, %v135_v48  ;;  %v3539_v33 = vld [vmem:[%s4522_s0 + $0x50] sm:$0xff] }
   0xe   :  { %v167_v1 = vrot.slane %v153_v55, %v3465_v37  ;;  %v232_v22 = vrot.slane %v224_v34, %v3451_v32  ;;  %v248_v23 = vrot.slane %v240_v35, %v3451_v32  ;;  %v264_v24 = vrot.slane %v256_v38, %v3451_v32  ;;  %v3162_v34 = vld [vmem:[%s4523_s1 + $0x34] ss:$8 sps:$4 sm:$0xff]   ;;  %v3164_v48 = vld [vmem:[%s4523_s1 + $0x30] ss:$8 sps:$4 sm:$0xff]  }
   0xf   :  { %v176_v59 = vrot.slane %v168_v51, %v3465_v37  ;;  %v183_v60 = vrot.slane %v169_v52, %v3465_v37  ;;  %v192_v0 = vrot.slane %v184_v54, %v3465_v37  ;;  %v199_v2 = vrot.slane %v185_v56, %v3465_v37  ;;  %893 = vmatpush1.bf16.msra.mxu0 %v3158_v16  ;;  %v46_v52 = vld [vmem:[%s4522_s0 + $0x30] sm:$0xff] }
  0x10   :  { %v223_v25 = vrot.slane %v209_v36, %v3451_v32  ;;  %v239_v28 = vrot.slane %v225_v39, %v3451_v32  ;;  %v255_v29 = vrot.slane %v241_v40, %v3451_v32  ;;  %v271_v30 = vrot.slane %v257_v11, %v3451_v32  ;;  %894 = vmatprep.subr.bf16.mxu0 %v3159_v21  ;;  %v54_v53 = vld [vmem:[%s4522_s0 + $0x70] sm:$0xff] }
  0x11   :  { %v201_v4 = vcombine.high %v144_v57, %v176_v59  ;;  %v202_v5 = vcombine.low %v151_v58, %v183_v60  ;;  %v200_v6 = vcombine.low %v144_v57, %v176_v59  ;;  %v203_v7 = vcombine.high %v151_v58, %v183_v60  ;;  %v58_v54 = vld [vmem:[%s4522_s0 + $0x90] sm:$0xff]  ;;  %v3165_v58 = vld [vmem:[%s4523_s1 + $0x44] ss:$8 sps:$4 sm:$0xff]  }
  0x12   :  { %v204_v8 = vcombine.low %v160_v63, %v192_v0  ;;  %v3498_v9 = vcombine.high %v160_v63, %v192_v0  ;;  %v206_v10 = vcombine.low %v167_v1, %v199_v2  ;;  %v3513_v20 = vcombine.high %v167_v1, %v199_v2  ;;  %v62_v55 = vld [vmem:[%s4522_s0 + $0xb0] sm:$0xff] }
  0x13   :  { %v2992_v13 = vpack.c.bf16 %v202_v5, %v201_v4  ;;  %v3502_v14 = vpack.c.bf16 %v201_v4, %v200_v6  ;;  %v3508_v17 = vpack.c.bf16 %v203_v7, %v202_v5  ;;  %v272_v35 = vcombine.low %v216_v15, %v232_v22  ;;  %v66_v56 = vld [vmem:[%s4522_s0 + $0xd0] sm:$0xff]  ;;  %895 = vmatpush1.bf16.msra.mxu0 %v3161_v26 }
  0x14   :  { %v2993_v18 = vpack.c.bf16 %v204_v8, %v203_v7  ;;  %v3511_v19 = vpack.c.bf16 %v3498_v9, %v204_v8  ;;  %v2994_v27 = vpack.c.bf16 %v206_v10, %v3498_v9  ;;  %v304_v36 = vcombine.low %v248_v23, %v264_v24  ;;  %v70_v57 = vld [vmem:[%s4522_s0 + $0xf0] sm:$0xff]  ;;  %896 = vmatprep.subr.bf16.mxu0 %v3162_v34  ;;  %v43_v34 = vld [vmem:[%s4522_s0 + $0x18] sm:$0xf] }
  0x15   :  { %656 = vrot.lane.b32.xlu0 %v2992_v13, %s3318_s21  ;;  %v273_v38 = vcombine.high %v216_v15, %v232_v22  ;;  %v305_v39 = vcombine.high %v248_v23, %v264_v24  ;;  %v288_v40 = vcombine.low %v223_v25, %v239_v28  ;;  %v320_v41 = vcombine.low %v255_v29, %v271_v30 }
  0x16   :  { %658 = vrot.lane.b32.xlu1 %v2993_v18, %s3318_s21  ;;  %v289_v42 = vcombine.high %v223_v25, %v239_v28  ;;  %v321_v43 = vcombine.high %v255_v29, %v271_v30  ;;  %v280_v44 = vrot.slane %v272_v35, %v3465_v37  ;;  %v312_v45 = vrot.slane %v304_v36, %v3465_v37  ;;  %v51_v35 = vld [vmem:[%s4522_s0 + $0x58] sm:$0xf] }
  0x17   :  { %v287_v46 = vrot.slane %v273_v38, %v3465_v37  ;;  %v319_v47 = vrot.slane %v305_v39, %v3465_v37  ;;  %v3556_v49 = vpack.c.bf16 %v3513_v20, %v206_v10  ;;  %v296_v50 = vrot.slane %v288_v40, %v3465_v37  ;;  %897 = vmatpush1.bf16.msra.mxu0 %v3164_v48  ;;  %v67_v48 = vld [vmem:[%s4522_s0 + $0xd8] sm:$0xf] }
  0x18   :  { %v328_v51 = vrot.slane %v320_v41, %v3465_v37  ;;  %v336_v59 = vcombine.low %v280_v44, %v312_v45  ;;  %v337_v60 = vcombine.high %v280_v44, %v312_v45  ;;  %v344_v62 = vcombine.low %v3534_v31, %v3539_v33  ;;  %898 = vmatprep.subr.bf16.mxu0 %v3165_v58  ;;  %v47_v44 = vld [vmem:[%s4522_s0 + $0x38] sm:$0xf] }
  0x19   :  { %685 = vrot.lane.b32.xlu0 %v3508_v17, %s3319_s30  ;;  %v338_v61 = vcombine.low %v287_v46, %v319_v47  ;;  %v339_v0 = vcombine.high %v287_v46, %v319_v47  ;;  %v303_v1 = vrot.slane %v289_v42, %v3465_v37  ;;  %v335_v2 = vrot.slane %v321_v43, %v3465_v37  ;;  %v55_v45 = vld [vmem:[%s4522_s0 + $0x78] sm:$0xf] }
  0x1a   :  { %687 = vrot.lane.b32.xlu1 %v3511_v19, %s3319_s30  ;;  %v2995_v63 = vpack.c.bf16 %v336_v59, %v3513_v20  ;;  %v3592_v4 = vpack.c.bf16 %v337_v60, %v336_v59  ;;  %v340_v6 = vcombine.low %v296_v50, %v328_v51  ;;  %v3594_v7 = vcombine.high %v296_v50, %v328_v51  ;;  %v59_v46 = vld [vmem:[%s4522_s0 + $0x98] sm:$0xf] }
  0x1b   :  { %v2996_v5 = vpack.c.bf16 %v338_v61, %v337_v60  ;;  %v352_v8 = vrot.slane %v344_v62, %v3451_v32  ;;  %v360_v9 = vcombine.low %v46_v52, %v54_v53  ;;  %v376_v10 = vcombine.low %v58_v54, %v66_v56  ;;  %899 = vmatpush1.bf16.msra.mxu0 %v3167_v3  ;;  %v63_v47 = vld [vmem:[%s4522_s0 + $0xb8] sm:$0xf] }
  0x1c   :  { %v392_v11 = vcombine.low %v62_v55, %v70_v57  ;;  %v345_v13 = vcombine.high %v3534_v31, %v3539_v33  ;;  %v361_v15 = vcombine.high %v46_v52, %v54_v53  ;;  %v377_v16 = vcombine.high %v58_v54, %v66_v56  ;;  %v71_v50 = vld [vmem:[%s4522_s0 + $0xf8] sm:$0xf]  ;;  %v788_v53 = vld [vmem:[%s4523_s1 + $0x50] sm:$0x33] }
  0x1d   :  { %660 = vrot.lane.b32.xlu0 %v2994_v27, %s3318_s21  ;;  %v393_v18 = vcombine.high %v62_v55, %v70_v57  ;;  %v3600_v20 = vpack.c.bf16 %v339_v0, %v338_v61  ;;  %v368_v21 = vrot.slane %v360_v9, %v3451_v32  ;;  %v384_v22 = vrot.slane %v376_v10, %v3451_v32 }
  0x1e   :  { %689 = vrot.lane.b32.xlu1 %v3556_v49, %s3319_s30  ;;  %v400_v23 = vrot.slane %v392_v11, %v3451_v32  ;;  %v359_v24 = vrot.slane %v345_v13, %v3451_v32  ;;  %v375_v25 = vrot.slane %v361_v15, %v3451_v32  ;;  %v391_v26 = vrot.slane %v377_v16, %v3451_v32 }
  0x1f   :  { %v407_v27 = vrot.slane %v393_v18, %v3451_v32  ;;  %v408_v28 = vcombine.low %v352_v8, %v368_v21  ;;  %v409_v30 = vcombine.high %v352_v8, %v368_v21  ;;  %v342_v33 = vcombine.low %v303_v1, %v335_v2 }
  0x20   :  { %v440_v29 = vcombine.low %v384_v22, %v400_v23  ;;  %v441_v31 = vcombine.high %v384_v22, %v400_v23  ;;  %v2997_v36 = vpack.c.bf16 %v340_v6, %v339_v0  ;;  %v343_v38 = vcombine.high %v303_v1, %v335_v2 }
  0x21   :  { %662 = vrot.lane.b32.xlu0 %v2995_v63, %s3318_s21  ;;  %v416_v39 = vrot.slane %v408_v28, %v3465_v37  ;;  %v3623_v41 = vpack.c.bf16 %v3594_v7, %v340_v6  ;;  %v424_v42 = vcombine.low %v359_v24, %v375_v25  ;;  %v456_v43 = vcombine.low %v391_v26, %v407_v27 }
  0x22   :  { %691 = vrot.lane.b32.xlu1 %v3592_v4, %s3319_s30  ;;  %v448_v40 = vrot.slane %v440_v29, %v3465_v37  ;;  %v423_v51 = vrot.slane %v409_v30, %v3465_v37  ;;  %v455_v52 = vrot.slane %v441_v31, %v3465_v37  ;;  %v2998_v55 = vpack.c.bf16 %v342_v33, %v3594_v7 }
  0x23   :  { %v3650_v56 = vpack.c.bf16 %v343_v38, %v342_v33  ;;  %v425_v57 = vcombine.high %v359_v24, %v375_v25  ;;  %v480_v58 = vcombine.low %v43_v34, %v51_v35  ;;  %v432_v60 = vrot.slane %v424_v42, %v3465_v37 }
  0x24   :  { %v472_v54 = vcombine.low %v416_v39, %v448_v40  ;;  %v473_v59 = vcombine.high %v416_v39, %v448_v40  ;;  %v464_v61 = vrot.slane %v456_v43, %v3465_v37  ;;  %v457_v62 = vcombine.high %v391_v26, %v407_v27 }
  0x25   :  { %664 = vrot.lane.b32.xlu0 %v2996_v5, %s3318_s21  ;;  %v474_v63 = vcombine.low %v423_v51, %v455_v52  ;;  %v488_v0 = vcombine.low %v47_v44, %v55_v45  ;;  %v496_v1 = vcombine.low %v59_v46, %v67_v48  ;;  %v504_v2 = vcombine.low %v63_v47, %v71_v50 }
  0x26   :  { %693 = vrot.lane.b32.xlu1 %v3600_v20, %s3319_s30  ;;  %v2999_v3 = vpack.c.bf16 %v472_v54, %v343_v38  ;;  %v2835_v5 = vcombine.high %v788_v53, %v788_v53  ;;  %v2834_v6 = vcombine.low %v788_v53, %v788_v53  ;;  %v487_v7 = vrot.slane %v480_v58, %v3451_v32 }
  0x27   :  { %v495_v8 = vrot.slane %v488_v0, %v3451_v32  ;;  %v503_v9 = vrot.slane %v496_v1, %v3451_v32  ;;  %v511_v10 = vrot.slane %v504_v2, %v3451_v32  ;;  %v3663_v11 = vpack.c.bf16 %v473_v59, %v472_v54 }
  0x28   :  { %v475_v13 = vcombine.high %v423_v51, %v455_v52  ;;  %2836 = vmatprep.subr.msk.bf16.mxu0 %vm883_vm0, %v2835_v5  ;;  %v885_v15 = vsel %vm883_vm0, %v2834_v6, 0  ;;  %v476_v16 = vcombine.low %v432_v60, %v464_v61  ;;  %v439_v18 = vrot.slane %v425_v57, %v3465_v37 }
  0x29   :  { %666 = vrot.lane.b32.xlu0 %v2997_v36, %s3318_s21  ;;  %901 = vmatpush1.bf16.msra.mxu0 %v885_v15  ;;  %v471_v21 = vrot.slane %v457_v62, %v3465_v37  ;;  %v3320_v22 = vmov 0   ;;  %v3000_v32 = vpack.c.bf16 %v474_v63, %v473_v59  ;;  %v512_v23 = vcombine.low %v487_v7, %v495_v8 }
  0x2a   :  { %695 = vrot.lane.b32.xlu1 %v3623_v41, %s3319_s30  ;;  %922 = vmatprep.mubr.bf16.mxu0 %v3320_v22  ;;  %v528_v24 = vcombine.low %v503_v9, %v511_v10  ;;  %v3672_v25 = vpack.c.bf16 %v475_v13, %v474_v63  ;;  %v477_v26 = vcombine.high %v432_v60, %v464_v61 }
  0x2b   :  { %2117 = vmatprep.subr.bf16.mxu0 %v3320_v22  ;;  %v3001_v27 = vpack.c.bf16 %v476_v16, %v475_v13  ;;  %v478_v28 = vcombine.low %v439_v18, %v471_v21  ;;  %v520_v29 = vrot.slane %v512_v23, %v3465_v37  ;;  %v513_v31 = vcombine.high %v487_v7, %v495_v8 }
  0x2c   :  { %v536_v30 = vrot.slane %v528_v24, %v3465_v37  ;;  %v529_v33 = vcombine.high %v503_v9, %v511_v10  ;;  %v3679_v34 = vpack.c.bf16 %v477_v26, %v476_v16  ;;  %v479_v35 = vcombine.high %v439_v18, %v471_v21 }
  0x2d   :  { %668 = vrot.lane.b32.xlu0 %v2998_v55, %s3318_s21  ;;  %v3002_v36 = vpack.c.bf16 %v478_v28, %v477_v26  ;;  %v527_v39 = vrot.slane %v513_v31, %v3465_v37 }
  0x2e   :  { %697 = vrot.lane.b32.xlu1 %v3650_v56, %s3319_s30  ;;  %v544_v38 = vcombine.low %v520_v29, %v536_v30  ;;  %v543_v40 = vrot.slane %v529_v33, %v3465_v37  ;;  %v3686_v42 = vpack.c.bf16 %v479_v35, %v478_v28  ;;  %v545_v43 = vcombine.high %v520_v29, %v536_v30 }
  0x30   :  { %v3003_v44 = vpack.c.bf16 %v544_v38, %v479_v35  ;;  %v546_v45 = vcombine.low %v527_v39, %v543_v40  ;;  %v3691_v46 = vpack.c.bf16 %v545_v43, %v544_v38  ;;  %v547_v47 = vcombine.high %v527_v39, %v543_v40 }
  0x31   :  { %670 = vrot.lane.b32.xlu0 %v2999_v3, %s3318_s21 }
  0x32   :  { %699 = vrot.lane.b32.xlu1 %v3663_v11, %s3319_s30  ;;  %v3004_v48 = vpack.c.bf16 %v546_v45, %v545_v43  ;;  %v3005_v37 = vpack.c.bf16 %v547_v47, %v546_v45 }
  0x35   :  { %672 = vrot.lane.b32.xlu0 %v3000_v32, %s3318_s21 }
  0x36   :  { %701 = vrot.lane.b32.xlu1 %v3672_v25, %s3319_s30 }
  0x39   :  { %674 = vrot.lane.b32.xlu0 %v3001_v27, %s3318_s21 }
  0x3a   :  { %703 = vrot.lane.b32.xlu1 %v3679_v34, %s3319_s30 }
  0x3d   :  { %676 = vrot.lane.b32.xlu0 %v3002_v36, %s3318_s21 }
  0x3e   :  { %705 = vrot.lane.b32.xlu1 %v3686_v42, %s3319_s30 }
  0x41   :  { %678 = vrot.lane.b32.xlu0 %v3003_v44, %s3318_s21 }
  0x42   :  { %707 = vrot.lane.b32.xlu1 %v3691_v46, %s3319_s30 }
  0x45   :  { %680 = vrot.lane.b32.xlu0 %v3004_v48, %s3318_s21 }
  0x46   :  { %709 = vrot.lane.b32.xlu1 %v3005_v37, %s3319_s30 }
  0x47   :  { %16 = vsyncpa [#allocation3], 0  ;;  %vm711_vm1 = vcmask 228352   ;;  %vm751_vm2 = vcmask 457728   ;;  %vm856_vm3 = vcmask 687104   ;;  %v793_v39 = vsub.s32 0, %v3411_v12 }
  0x48   :  { %v789_v40 = vld [vmem:[%s4524_s2] sm:$0x3]  ;;  %s3321_s2 = smov 50   ;;  %vm1663_vm4 = vcmask 1044480   ;;  %vm1209_vm5 = vcmask 408576   ;;  %vm1262_vm6 = vcmask 1043456  }
  0x49   :  { %v3769_v43 = vrot.slane %v789_v40, %v793_v39  ;;  %s3322_s0 = smov 78   ;;  %vm1299_vm7 = vcmask 637952   ;;  %vm1650_vm8 = vcmask 867328   ;;  %vm1916_vm9 = vcmask 523264  }
  0x4a   :  { %vm2113_vm10 = vcmask 261120   ;;  %vm3325_vm11 = vmmov 0  }
  0x87   :  { %v657_v50 = vpop.permute.xlu0 %656 }
  0x88   :  { %v714_v51 = vsel %vm711_vm1, %v3502_v14, %v657_v50  ;;  %v659_v53 = vpop.permute.xlu1 %658 }
  0x89   :  { %v717_v55 = vsel %vm711_vm1, %v3508_v17, %v659_v53 }
  0x8b   :  { %v686_v52 = vpop.permute.xlu0 %685 }
  0x8c   :  { %v753_v54 = vsel %vm751_vm2, %v714_v51, %v686_v52  ;;  %v688_v57 = vpop.permute.xlu1 %687 }
  0x8d   :  { %2837 = vmatmul.mubr.msk.bf16.vlgmr.msra.gmra.mrb[0].mxu0 %vm856_vm3, %v753_v54  ;;  %v755_v58 = vsel %vm751_vm2, %v717_v55, %v688_v57 }
  0x8e   :  { %932 = vmatprep.mubr.bf16.mxu0 %v3320_v22 }
  0x8f   :  { %v661_v59 = vpop.permute.xlu0 %660 }
  0x90   :  { %v720_v14 = vsel %vm711_vm1, %v3511_v19, %v661_v59  ;;  %v690_v60 = vpop.permute.xlu1 %689 }
  0x91   :  { %v757_v61 = vsel %vm751_vm2, %v720_v14, %v690_v60 }
  0x93   :  { %v663_v62 = vpop.permute.xlu0 %662 }
  0x94   :  { %v723_v17 = vsel %vm711_vm1, %v3556_v49, %v663_v62  ;;  %v692_v63 = vpop.permute.xlu1 %691 }
  0x95   :  { %2838 = vmatmul.mubr.msk.bf16.gmra.mrb[4].mxu0 %vm856_vm3, %v755_v58  ;;  %v759_v0 = vsel %vm751_vm2, %v723_v17, %v692_v63 }
  0x96   :  { %942 = vmatprep.mubr.bf16.mxu0 %v3320_v22 }
  0x97   :  { %v665_v1 = vpop.permute.xlu0 %664 }
  0x98   :  { %v726_v19 = vsel %vm711_vm1, %v3592_v4, %v665_v1  ;;  %v694_v2 = vpop.permute.xlu1 %693 }
  0x99   :  { %v761_v3 = vsel %vm751_vm2, %v726_v19, %v694_v2 }
  0x9b   :  { %v667_v5 = vpop.permute.xlu0 %666 }
  0x9c   :  { %v729_v49 = vsel %vm711_vm1, %v3600_v20, %v667_v5  ;;  %v696_v6 = vpop.permute.xlu1 %695 }
  0x9d   :  { %2839 = vmatmul.mubr.msk.bf16.gmra.mrb[8].mxu0 %vm856_vm3, %v757_v61  ;;  %v763_v7 = vsel %vm751_vm2, %v729_v49, %v696_v6 }
  0x9e   :  { %952 = vmatprep.mubr.bf16.mxu0 %v3320_v22 }
  0x9f   :  { %v669_v8 = vpop.permute.xlu0 %668 }
  0xa0   :  { %v732_v4 = vsel %vm711_vm1, %v3623_v41, %v669_v8  ;;  %v698_v9 = vpop.permute.xlu1 %697 }
  0xa1   :  { %v765_v10 = vsel %vm751_vm2, %v732_v4, %v698_v9 }
  0xa3   :  { %v671_v13 = vpop.permute.xlu0 %670 }
  0xa4   :  { %v735_v20 = vsel %vm711_vm1, %v3650_v56, %v671_v13  ;;  %v700_v15 = vpop.permute.xlu1 %699 }
  0xa5   :  { %2840 = vmatmul.mubr.msk.bf16.gmra.mrb[12].mxu0 %vm856_vm3, %v759_v0  ;;  %v767_v16 = vsel %vm751_vm2, %v735_v20, %v700_v15 }
  0xa6   :  { %962 = vmatprep.mubr.bf16.mxu0 %v3320_v22 }
  0xa7   :  { %v673_v18 = vpop.permute.xlu0 %672 }
  0xa8   :  { %v738_v41 = vsel %vm711_vm1, %v3663_v11, %v673_v18  ;;  %v702_v21 = vpop.permute.xlu1 %701 }
  0xa9   :  { %v769_v32 = vsel %vm751_vm2, %v738_v41, %v702_v21 }
  0xab   :  { %v675_v23 = vpop.permute.xlu0 %674 }
  0xac   :  { %v741_v56 = vsel %vm711_vm1, %v3672_v25, %v675_v23  ;;  %v704_v24 = vpop.permute.xlu1 %703 }
  0xad   :  { %2841 = vmatmul.mubr.msk.bf16.gmra.mrb[16].mxu0 %vm856_vm3, %v761_v3  ;;  %v771_v26 = vsel %vm751_vm2, %v741_v56, %v704_v24 }
  0xae   :  { %972 = vmatprep.mubr.bf16.mxu0 %v3320_v22 }
  0xaf   :  { %v677_v27 = vpop.permute.xlu0 %676 }
  0xb0   :  { %v744_v11 = vsel %vm711_vm1, %v3679_v34, %v677_v27  ;;  %v706_v28 = vpop.permute.xlu1 %705 }
  0xb1   :  { %v773_v29 = vsel %vm751_vm2, %v744_v11, %v706_v28 }
  0xb3   :  { %v679_v30 = vpop.permute.xlu0 %678 }
  0xb4   :  { %v747_v25 = vsel %vm711_vm1, %v3686_v42, %v679_v30  ;;  %v708_v31 = vpop.permute.xlu1 %707  ;;  %v797_v42 = vsub.s32 1, %v3411_v12 }
  0xb5   :  { %2842 = vmatmul.mubr.msk.bf16.gmra.mrb[20].mxu0 %vm856_vm3, %v763_v7  ;;  %v775_v33 = vsel %vm751_vm2, %v747_v25, %v708_v31 }
  0xb6   :  { %982 = vmatprep.mubr.bf16.mxu0 %v3320_v22  ;;  %v3773_v44 = vrot.slane %v789_v40, %v797_v42 }
  0xb7   :  { %v681_v35 = vpop.permute.xlu0 %680 }
  0xb8   :  { %v750_v34 = vsel %vm711_vm1, %v3691_v46, %v681_v35  ;;  %v710_v36 = vpop.permute.xlu1 %709 }
  0xb9   :  { %v777_v38 = vsel %vm751_vm2, %v750_v34, %v710_v36 }
  0xbd   :  { %2843 = vmatmul.mubr.msk.bf16.gmra.mrb[24].mxu0 %vm856_vm3, %v765_v10 }
  0xbe   :  { %992 = vmatprep.mubr.bf16.mxu0 %v3320_v22 }
  0xc5   :  { %2844 = vmatmul.mubr.msk.bf16.gmra.mrb[28].mxu0 %vm856_vm3, %v767_v16 }
  0xc6   :  { %1002 = vmatprep.mubr.bf16.mxu0 %v3320_v22 }
  0xcd   :  { %2845 = vmatmul.mubr.msk.bf16.gmra.mrb[32].mxu0 %vm856_vm3, %v769_v32 }
  0xce   :  { %1012 = vmatprep.mubr.bf16.mxu0 %v3320_v22 }
  0xd5   :  { %2846 = vmatmul.mubr.msk.bf16.gmra.mrb[36].mxu0 %vm856_vm3, %v771_v26 }
  0xd6   :  { %1022 = vmatprep.mubr.bf16.mxu0 %v3320_v22 }
  0xdd   :  { %2847 = vmatmul.mubr.msk.bf16.gmra.mrb[40].mxu0 %vm856_vm3, %v773_v29 }
  0xde   :  { %1032 = vmatprep.mubr.bf16.mxu0 %v3320_v22 }
  0xe5   :  { %2848 = vmatmul.mubr.msk.bf16.gmra.mrb[44].mxu0 %vm856_vm3, %v775_v33 }
  0xe6   :  { %1042 = vmatprep.mubr.bf16.mxu0 %v3320_v22 }
  0xed   :  { %2849 = vmatmul.mubr.msk.bf16.gmra.mrb[48].mxu0 %vm856_vm3, %v777_v38 }
 0x160   :  { %v924_v45 = vpop.f32.mrb[0].mxu0 }
 0x161   :  { %v925_v46 = vadd.f32 %v924_v45, %v3769_v43  ;;  %v926_v47 = vpop.f32.mrb[1].mxu0 }
 0x162   :  { %v927_v48 = vadd.f32 %v926_v47, %v3773_v44  ;;  %v928_v37 = vpop.f32.mrb[2].mxu0 }
 0x163   :  { %v929_v50 = vadd.f32 %v928_v37, %v3769_v43  ;;  %v930_v51 = vpop.f32.mrb[3].mxu0  ;;  %v1053_v53 = vmax.f32 %v925_v46, 0.0 }
 0x164   :  { %v931_v52 = vadd.f32 %v930_v51, %v3773_v44  ;;  %v1054_v55 = vmax.f32 %v927_v48, 0.0 }
 0x165   :  { %v1055_v54 = vmax.f32 %v929_v50, 0.0 }
 0x166   :  { %v1056_v57 = vmax.f32 %v931_v52, 0.0 }
 0x167   :  { %v3779_v58 = vmax.f32 %v1053_v53, %v1055_v54 }
 0x168   :  { %v1106_v59 = vmax.f32 %v1054_v55, %v1056_v57  ;;  %v934_v14 = vpop.f32.mrb[4].mxu0 }
 0x169   :  { %v935_v60 = vadd.f32 %v934_v14, %v3769_v43  ;;  %v936_v61 = vpop.f32.mrb[5].mxu0 }
 0x16a   :  { %v937_v62 = vadd.f32 %v936_v61, %v3773_v44  ;;  %v938_v17 = vpop.f32.mrb[6].mxu0  ;;  %v3063_v63 = vpack.i.bf16 %v1106_v59, %v3779_v58 }
 0x16b   :  { %v939_v0 = vadd.f32 %v938_v17, %v3769_v43  ;;  %v940_v1 = vpop.f32.mrb[7].mxu0  ;;  %v1057_v2 = vmax.f32 %v935_v60, 0.0 }
 0x16c   :  { %v941_v19 = vadd.f32 %v940_v1, %v3773_v44  ;;  %3064 = vrot.lane.b32.xlu0 %v3063_v63, %s3321_s2  ;;  %v1058_v5 = vmax.f32 %v937_v62, 0.0 }
 0x16d   :  { %v1059_v3 = vmax.f32 %v939_v0, 0.0 }
 0x16e   :  { %v1060_v49 = vmax.f32 %v941_v19, 0.0 }
 0x16f   :  { %v3787_v6 = vmax.f32 %v1057_v2, %v1059_v3 }
 0x170   :  { %v1108_v7 = vmax.f32 %v1058_v5, %v1060_v49  ;;  %v944_v8 = vpop.f32.mrb[8].mxu0 }
 0x171   :  { %v945_v4 = vadd.f32 %v944_v8, %v3769_v43  ;;  %v946_v9 = vpop.f32.mrb[9].mxu0 }
 0x172   :  { %v947_v10 = vadd.f32 %v946_v9, %v3773_v44  ;;  %v948_v13 = vpop.f32.mrb[10].mxu0  ;;  %v3068_v20 = vpack.i.bf16 %v1108_v7, %v3787_v6 }
 0x173   :  { %v949_v15 = vadd.f32 %v948_v13, %v3769_v43  ;;  %v950_v16 = vpop.f32.mrb[11].mxu0  ;;  %v1061_v41 = vmax.f32 %v945_v4, 0.0 }
 0x174   :  { %v951_v18 = vadd.f32 %v950_v16, %v3773_v44  ;;  %3069 = vrot.lane.b32.xlu1 %v3068_v20, %s3321_s2  ;;  %v1062_v32 = vmax.f32 %v947_v10, 0.0 }
 0x175   :  { %v1063_v21 = vmax.f32 %v949_v15, 0.0 }
 0x176   :  { %v1064_v23 = vmax.f32 %v951_v18, 0.0 }
 0x177   :  { %v3795_v56 = vmax.f32 %v1061_v41, %v1063_v21 }
 0x178   :  { %v1110_v24 = vmax.f32 %v1062_v32, %v1064_v23  ;;  %v954_v26 = vpop.f32.mrb[12].mxu0 }
 0x179   :  { %v955_v27 = vadd.f32 %v954_v26, %v3769_v43  ;;  %v956_v11 = vpop.f32.mrb[13].mxu0 }
 0x17a   :  { %v957_v28 = vadd.f32 %v956_v11, %v3773_v44  ;;  %v958_v29 = vpop.f32.mrb[14].mxu0  ;;  %v3073_v30 = vpack.i.bf16 %v1110_v24, %v3795_v56 }
 0x17b   :  { %v959_v25 = vadd.f32 %v958_v29, %v3769_v43  ;;  %v960_v31 = vpop.f32.mrb[15].mxu0  ;;  %v1065_v35 = vmax.f32 %v955_v27, 0.0 }
 0x17c   :  { %v961_v33 = vadd.f32 %v960_v31, %v3773_v44  ;;  %3074 = vrot.lane.b32.xlu0 %v3073_v30, %s3321_s2  ;;  %v1066_v36 = vmax.f32 %v957_v28, 0.0 }
 0x17d   :  { %v1067_v34 = vmax.f32 %v959_v25, 0.0 }
 0x17e   :  { %v1068_v38 = vmax.f32 %v961_v33, 0.0 }
 0x17f   :  { %v3803_v40 = vmax.f32 %v1065_v35, %v1067_v34 }
 0x180   :  { %v1112_v45 = vmax.f32 %v1066_v36, %v1068_v38  ;;  %v964_v46 = vpop.f32.mrb[16].mxu0 }
 0x181   :  { %v965_v47 = vadd.f32 %v964_v46, %v3769_v43  ;;  %v966_v48 = vpop.f32.mrb[17].mxu0 }
 0x182   :  { %v967_v37 = vadd.f32 %v966_v48, %v3773_v44  ;;  %v968_v50 = vpop.f32.mrb[18].mxu0  ;;  %v3078_v51 = vpack.i.bf16 %v1112_v45, %v3803_v40 }
 0x183   :  { %v969_v52 = vadd.f32 %v968_v50, %v3769_v43  ;;  %v970_v53 = vpop.f32.mrb[19].mxu0  ;;  %v1069_v55 = vmax.f32 %v965_v47, 0.0 }
 0x184   :  { %v971_v54 = vadd.f32 %v970_v53, %v3773_v44  ;;  %3079 = vrot.lane.b32.xlu1 %v3078_v51, %s3321_s2  ;;  %v1070_v59 = vmax.f32 %v967_v37, 0.0 }
 0x185   :  { %v1071_v57 = vmax.f32 %v969_v52, 0.0 }
 0x186   :  { %v1072_v14 = vmax.f32 %v971_v54, 0.0 }
 0x187   :  { %v3811_v60 = vmax.f32 %v1069_v55, %v1071_v57 }
 0x188   :  { %v1114_v61 = vmax.f32 %v1070_v59, %v1072_v14  ;;  %v974_v62 = vpop.f32.mrb[20].mxu0 }
 0x189   :  { %v975_v17 = vadd.f32 %v974_v62, %v3769_v43  ;;  %v976_v63 = vpop.f32.mrb[21].mxu0 }
 0x18a   :  { %v977_v0 = vadd.f32 %v976_v63, %v3773_v44  ;;  %v978_v1 = vpop.f32.mrb[22].mxu0  ;;  %v3083_v19 = vpack.i.bf16 %v1114_v61, %v3811_v60 }
 0x18b   :  { %v979_v2 = vadd.f32 %v978_v1, %v3769_v43  ;;  %v980_v3 = vpop.f32.mrb[23].mxu0  ;;  %v1073_v49 = vmax.f32 %v975_v17, 0.0 }
 0x18c   :  { %v981_v5 = vadd.f32 %v980_v3, %v3773_v44  ;;  %3084 = vrot.lane.b32.xlu0 %v3083_v19, %s3321_s2  ;;  %v1074_v8 = vmax.f32 %v977_v0, 0.0 }
 0x18d   :  { %v1075_v7 = vmax.f32 %v979_v2, 0.0 }
 0x18e   :  { %v1076_v4 = vmax.f32 %v981_v5, 0.0 }
 0x18f   :  { %v3819_v9 = vmax.f32 %v1073_v49, %v1075_v7 }
 0x190   :  { %v1116_v10 = vmax.f32 %v1074_v8, %v1076_v4  ;;  %v984_v13 = vpop.f32.mrb[24].mxu0 }
 0x191   :  { %v985_v20 = vadd.f32 %v984_v13, %v3769_v43  ;;  %v986_v15 = vpop.f32.mrb[25].mxu0 }
 0x192   :  { %v987_v16 = vadd.f32 %v986_v15, %v3773_v44  ;;  %v988_v18 = vpop.f32.mrb[26].mxu0  ;;  %v3088_v41 = vpack.i.bf16 %v1116_v10, %v3819_v9 }
 0x193   :  { %v989_v21 = vadd.f32 %v988_v18, %v3769_v43  ;;  %v990_v32 = vpop.f32.mrb[27].mxu0  ;;  %v1077_v24 = vmax.f32 %v985_v20, 0.0 }
 0x194   :  { %v991_v23 = vadd.f32 %v990_v32, %v3773_v44  ;;  %3089 = vrot.lane.b32.xlu1 %v3088_v41, %s3321_s2  ;;  %v1078_v27 = vmax.f32 %v987_v16, 0.0 }
 0x195   :  { %v1079_v26 = vmax.f32 %v989_v21, 0.0 }
 0x196   :  { %v1080_v11 = vmax.f32 %v991_v23, 0.0 }
 0x197   :  { %v3827_v28 = vmax.f32 %v1077_v24, %v1079_v26 }
 0x198   :  { %v1118_v29 = vmax.f32 %v1078_v27, %v1080_v11  ;;  %v994_v30 = vpop.f32.mrb[28].mxu0 }
 0x199   :  { %v995_v25 = vadd.f32 %v994_v30, %v3769_v43  ;;  %v996_v31 = vpop.f32.mrb[29].mxu0 }
 0x19a   :  { %v997_v33 = vadd.f32 %v996_v31, %v3773_v44  ;;  %v998_v35 = vpop.f32.mrb[30].mxu0  ;;  %v3093_v34 = vpack.i.bf16 %v1118_v29, %v3827_v28 }
 0x19b   :  { %v999_v36 = vadd.f32 %v998_v35, %v3769_v43  ;;  %v1000_v38 = vpop.f32.mrb[31].mxu0  ;;  %v1081_v46 = vmax.f32 %v995_v25, 0.0 }
 0x19c   :  { %v1001_v45 = vadd.f32 %v1000_v38, %v3773_v44  ;;  %3094 = vrot.lane.b32.xlu0 %v3093_v34, %s3321_s2  ;;  %v1082_v48 = vmax.f32 %v997_v33, 0.0 }
 0x19d   :  { %v1083_v47 = vmax.f32 %v999_v36, 0.0 }
 0x19e   :  { %v1084_v37 = vmax.f32 %v1001_v45, 0.0 }
 0x19f   :  { %v3835_v50 = vmax.f32 %v1081_v46, %v1083_v47  ;;  %v3170_v47 = vld [vmem:[%s4525_s3 + $0x4] ss:$12 sps:$4 sm:$0xff]  }
 0x1a0   :  { %v1120_v51 = vmax.f32 %v1082_v48, %v1084_v37  ;;  %v1004_v52 = vpop.f32.mrb[32].mxu0  ;;  %1673 = vmatprep.subr.bf16.mxu1 %v3170_v47  ;;  %v3199_v47 = vld [vmem:[%s4525_s3 + $0xd8] ss:$12 sps:$4 sm:$0xff]  }
 0x1a1   :  { %v1005_v53 = vadd.f32 %v1004_v52, %v3769_v43  ;;  %v1006_v54 = vpop.f32.mrb[33].mxu0  ;;  %v3173_v52 = vld [vmem:[%s4525_s3 + $0x1c] ss:$12 sps:$4 sm:$0xff]  }
 0x1a2   :  { %v1007_v55 = vadd.f32 %v1006_v54, %v3773_v44  ;;  %v1008_v57 = vpop.f32.mrb[34].mxu0  ;;  %v3098_v59 = vpack.i.bf16 %v1120_v51, %v3835_v50  ;;  %v3172_v51 = vld [vmem:[%s4525_s3] ss:$12 sps:$4 sm:$0xff]  }
 0x1a3   :  { %v1009_v14 = vadd.f32 %v1008_v57, %v3769_v43  ;;  %v1010_v61 = vpop.f32.mrb[35].mxu0  ;;  %v1085_v17 = vmax.f32 %v1005_v53, 0.0  ;;  %1674 = vmatpush1.bf16.msra.mxu1 %v3172_v51  ;;  %v3203_v51 = vld [vmem:[%s4525_s3 + $0x10c] ss:$12 sps:$4 sm:$0xff]  }
 0x1a4   :  { %v1011_v62 = vadd.f32 %v1010_v61, %v3773_v44  ;;  %3099 = vrot.lane.b32.xlu1 %v3098_v59, %s3321_s2  ;;  %v1086_v0 = vmax.f32 %v1007_v55, 0.0  ;;  %1675 = vmatprep.subr.bf16.mxu1 %v3173_v52  ;;  %v3205_v52 = vld [vmem:[%s4525_s3 + $0x108] ss:$12 sps:$4 sm:$0xff]  }
 0x1a5   :  { %v1087_v63 = vmax.f32 %v1009_v14, 0.0 }
 0x1a6   :  { %v1088_v1 = vmax.f32 %v1011_v62, 0.0 }
 0x1a7   :  { %v3843_v19 = vmax.f32 %v1085_v17, %v1087_v63  ;;  %v3175_v17 = vld [vmem:[%s4525_s3 + $0x18] ss:$12 sps:$4 sm:$0xff]  }
 0x1a8   :  { %v1122_v2 = vmax.f32 %v1086_v0, %v1088_v1  ;;  %v1014_v3 = vpop.f32.mrb[36].mxu0  ;;  %1676 = vmatpush1.bf16.msra.mxu1 %v3175_v17 }
 0x1a9   :  { %v1015_v5 = vadd.f32 %v1014_v3, %v3769_v43  ;;  %v1016_v49 = vpop.f32.mrb[37].mxu0 }
 0x1aa   :  { %v1017_v7 = vadd.f32 %v1016_v49, %v3773_v44  ;;  %v1018_v8 = vpop.f32.mrb[38].mxu0  ;;  %v3103_v4 = vpack.i.bf16 %v1122_v2, %v3843_v19 }
 0x1ab   :  { %v1019_v10 = vadd.f32 %v1018_v8, %v3769_v43  ;;  %v1020_v13 = vpop.f32.mrb[39].mxu0  ;;  %v1089_v15 = vmax.f32 %v1015_v5, 0.0  ;;  %v3176_v5 = vld [vmem:[%s4525_s3 + $0x34] ss:$12 sps:$4 sm:$0xff]   ;;  %v3178_v8 = vld [vmem:[%s4525_s3 + $0x30] ss:$12 sps:$4 sm:$0xff]  }
 0x1ac   :  { %v1021_v20 = vadd.f32 %v1020_v13, %v3773_v44  ;;  %3104 = vrot.lane.b32.xlu0 %v3103_v4, %s3321_s2  ;;  %v1090_v18 = vmax.f32 %v1017_v7, 0.0  ;;  %1677 = vmatprep.subr.bf16.mxu1 %v3176_v5 }
 0x1ad   :  { %v1091_v16 = vmax.f32 %v1019_v10, 0.0  ;;  %1678 = vmatpush1.bf16.msra.mxu1 %v3178_v8 }
 0x1ae   :  { %v1092_v41 = vmax.f32 %v1021_v20, 0.0 }
 0x1af   :  { %v3851_v21 = vmax.f32 %v1089_v15, %v1091_v16 }
 0x1b0   :  { %v1124_v32 = vmax.f32 %v1090_v18, %v1092_v41  ;;  %v1024_v23 = vpop.f32.mrb[40].mxu0 }
 0x1b1   :  { %v1025_v24 = vadd.f32 %v1024_v23, %v3769_v43  ;;  %v1026_v26 = vpop.f32.mrb[41].mxu0 }
 0x1b2   :  { %v1027_v27 = vadd.f32 %v1026_v26, %v3773_v44  ;;  %v1028_v11 = vpop.f32.mrb[42].mxu0  ;;  %v3108_v29 = vpack.i.bf16 %v1124_v32, %v3851_v21  ;;  %v3179_v32 = vld [vmem:[%s4525_s3 + $0x4c] ss:$12 sps:$4 sm:$0xff]  }
 0x1b3   :  { %v1029_v30 = vadd.f32 %v1028_v11, %v3769_v43  ;;  %v1030_v25 = vpop.f32.mrb[43].mxu0  ;;  %v1093_v33 = vmax.f32 %v1025_v24, 0.0  ;;  %v3181_v24 = vld [vmem:[%s4525_s3 + $0x48] ss:$12 sps:$4 sm:$0xff]   ;;  %1679 = vmatprep.subr.bf16.mxu1 %v3179_v32 }
 0x1b4   :  { %v1031_v31 = vadd.f32 %v1030_v25, %v3773_v44  ;;  %3109 = vrot.lane.b32.xlu1 %v3108_v29, %s3321_s2  ;;  %v1094_v34 = vmax.f32 %v1027_v27, 0.0  ;;  %1680 = vmatpush1.bf16.msra.mxu1 %v3181_v24  ;;  %v3185_v29 = vld [vmem:[%s4525_s3 + $0x7c] ss:$12 sps:$4 sm:$0xff]   ;;  %v3187_v25 = vld [vmem:[%s4525_s3 + $0x78] ss:$12 sps:$4 sm:$0xff]  }
 0x1b5   :  { %v1095_v35 = vmax.f32 %v1029_v30, 0.0 }
 0x1b6   :  { %v1096_v36 = vmax.f32 %v1031_v31, 0.0  ;;  %v3188_v31 = vld [vmem:[%s4525_s3 + $0x94] ss:$12 sps:$4 sm:$0xff]  }
 0x1b7   :  { %v3859_v38 = vmax.f32 %v1093_v33, %v1095_v35  ;;  %v3190_v33 = vld [vmem:[%s4525_s3 + $0x90] ss:$12 sps:$4 sm:$0xff]   ;;  %v3191_v35 = vld [vmem:[%s4525_s3 + $0xac] ss:$12 sps:$4 sm:$0xff]  }
 0x1b8   :  { %v1126_v45 = vmax.f32 %v1094_v34, %v1096_v36  ;;  %v1034_v46 = vpop.f32.mrb[44].mxu0  ;;  %v3193_v34 = vld [vmem:[%s4525_s3 + $0xa8] ss:$12 sps:$4 sm:$0xff]   ;;  %v3194_v36 = vld [vmem:[%s4525_s3 + $0xc4] ss:$12 sps:$4 sm:$0xff]  }
 0x1b9   :  { %v1035_v48 = vadd.f32 %v1034_v46, %v3769_v43  ;;  %v1036_v37 = vpop.f32.mrb[45].mxu0  ;;  %v3197_v46 = vld [vmem:[%s4525_s3 + $0xdc] ss:$12 sps:$4 sm:$0xff]  }
 0x1ba   :  { %v1037_v53 = vadd.f32 %v1036_v37, %v3773_v44  ;;  %v1038_v54 = vpop.f32.mrb[46].mxu0  ;;  %v3113_v55 = vpack.i.bf16 %v1126_v45, %v3859_v38  ;;  %v3196_v45 = vld [vmem:[%s4525_s3 + $0xc0] ss:$12 sps:$4 sm:$0xff]   ;;  %v3202_v37 = vld [vmem:[%s4525_s3 + $0xf0] ss:$12 sps:$4 sm:$0xff]  }
 0x1bb   :  { %v1039_v57 = vadd.f32 %v1038_v54, %v3769_v43  ;;  %v1040_v59 = vpop.f32.mrb[47].mxu0  ;;  %v1097_v61 = vmax.f32 %v1035_v48, 0.0  ;;  %v3200_v48 = vld [vmem:[%s4525_s3 + $0xf4] ss:$12 sps:$4 sm:$0xff]  }
 0x1bc   :  { %v1041_v14 = vadd.f32 %v1040_v59, %v3773_v44  ;;  %3114 = vrot.lane.b32.xlu0 %v3113_v55, %s3321_s2  ;;  %v1098_v63 = vmax.f32 %v1037_v53, 0.0  ;;  %v3206_v53 = vld [vmem:[%s4525_s3 + $0x124] ss:$12 sps:$4 sm:$0xff]   ;;  %v3208_v54 = vld [vmem:[%s4525_s3 + $0x120] ss:$12 sps:$4 sm:$0xff]  }
 0x1bd   :  { %v1099_v62 = vmax.f32 %v1039_v57, 0.0  ;;  %v3209_v55 = vld [vmem:[%s4525_s3 + $0x13c] ss:$12 sps:$4 sm:$0xff]   ;;  %v3211_v57 = vld [vmem:[%s4525_s3 + $0x138] ss:$12 sps:$4 sm:$0xff]  }
 0x1be   :  { %v1100_v0 = vmax.f32 %v1041_v14, 0.0 }
 0x1bf   :  { %v3879_v1 = vmax.f32 %v1097_v61, %v1099_v62 }
 0x1c0   :  { %v1128_v2 = vmax.f32 %v1098_v63, %v1100_v0  ;;  %v1044_v3 = vpop.f32.mrb[48].mxu0  ;;  %v3212_v63 = vld [vmem:[%s4525_s3 + $0x154] ss:$12 sps:$4 sm:$0x1f]  }
 0x1c1   :  { %v1045_v49 = vadd.f32 %v1044_v3, %v3769_v43  ;;  %v1046_v7 = vpop.f32.mrb[49].mxu0  ;;  %v3214_v3 = vld [vmem:[%s4525_s3 + $0x150] ss:$12 sps:$4 sm:$0x1f]  }
 0x1c2   :  { %v1047_v4 = vadd.f32 %v1046_v7, %v3773_v44  ;;  %v1048_v10 = vpop.f32.mrb[50].mxu0  ;;  %v3118_v13 = vpack.i.bf16 %v1128_v2, %v3879_v1  ;;  %v1665_v8 = vsel %vm1663_vm4, %v3214_v3, 0 }
 0x1c3   :  { %v1101_v20 = vmax.f32 %v1045_v49, 0.0  ;;  %v1049_v15 = vadd.f32 %v1048_v10, %v3769_v43  ;;  %v1050_v16 = vpop.f32.mrb[51].mxu0  ;;  %v3182_v43 = vld [vmem:[%s4525_s3 + $0x64] ss:$12 sps:$4 sm:$0xff]  }
 0x1c4   :  { %v1102_v18 = vmax.f32 %v1047_v4, 0.0  ;;  %v1051_v41 = vadd.f32 %v1050_v16, %v3773_v44  ;;  %3119 = vrot.lane.b32.xlu1 %v3118_v13, %s3321_s2  ;;  %v3184_v44 = vld [vmem:[%s4525_s3 + $0x60] ss:$12 sps:$4 sm:$0xff]   ;;  %1681 = vmatprep.subr.bf16.mxu1 %v3182_v43 }
 0x1c5   :  { %v1103_v23 = vmax.f32 %v1049_v15, 0.0  ;;  %1682 = vmatpush1.bf16.msra.mxu1 %v3184_v44 }
 0x1c6   :  { %v1104_v26 = vmax.f32 %v1051_v41, 0.0  ;;  %1683 = vmatprep.subr.bf16.mxu1 %v3185_v29 }
 0x1c7   :  { %v3902_v27 = vmax.f32 %v1101_v20, %v1103_v23 }
 0x1c8   :  { %v1130_v11 = vmax.f32 %v1102_v18, %v1104_v26 }
 0x1c9   :  { %1684 = vmatpush1.bf16.msra.mxu1 %v3187_v25 }
 0x1ca   :  { %v3123_v30 = vpack.i.bf16 %v1130_v11, %v3902_v27  ;;  %1685 = vmatprep.subr.bf16.mxu1 %v3188_v31 }
 0x1cc   :  { %3124 = vrot.lane.b32.xlu0 %v3123_v30, %s3321_s2 }
 0x1cd   :  { %1686 = vmatpush1.bf16.msra.mxu1 %v3190_v33 }
 0x1ce   :  { %1687 = vmatprep.subr.bf16.mxu1 %v3191_v35 }
 0x1d1   :  { %1688 = vmatpush1.bf16.msra.mxu1 %v3193_v34 }
 0x1d2   :  { %1689 = vmatprep.subr.bf16.mxu1 %v3194_v36 }
 0x1d5   :  { %1690 = vmatpush1.bf16.msra.mxu1 %v3196_v45 }
 0x1d6   :  { %1691 = vmatprep.subr.bf16.mxu1 %v3197_v46 }
 0x1d9   :  { %1692 = vmatpush1.bf16.msra.mxu1 %v3199_v47 }
 0x1da   :  { %1693 = vmatprep.subr.bf16.mxu1 %v3200_v48 }
 0x1dd   :  { %1694 = vmatpush1.bf16.msra.mxu1 %v3202_v37 }
 0x1de   :  { %1695 = vmatprep.subr.bf16.mxu1 %v3203_v51  ;;  %v3065_v59 = vpop.permute.xlu0 %3064 }
 0x1df   :  { %v3067_v0 = vunpack.i.h.bf16 %v3065_v59  ;;  %v3066_v2 = vunpack.i.l.bf16 %v3065_v59 }
 0x1e1   :  { %1696 = vmatpush1.bf16.msra.mxu1 %v3205_v52  ;;  %v1210_v4 = vsel %vm1209_vm5, %v3066_v2, %v3067_v0 }
 0x1e2   :  { %1697 = vmatprep.subr.bf16.mxu1 %v3206_v53  ;;  %v1236_v18 = vmax.f32 %v3779_v58, %v1210_v4 }
 0x1e5   :  { %1698 = vmatpush1.bf16.msra.mxu1 %v3208_v54 }
 0x1e6   :  { %v3070_v14 = vpop.permute.xlu1 %3069  ;;  %1699 = vmatprep.subr.bf16.mxu1 %v3209_v55 }
 0x1e7   :  { %v3072_v61 = vunpack.i.h.bf16 %v3070_v14  ;;  %v3071_v62 = vunpack.i.l.bf16 %v3070_v14 }
 0x1e9   :  { %1700 = vmatpush1.bf16.msra.mxu1 %v3211_v57  ;;  %v1211_v5 = vsel %vm1209_vm5, %v3071_v62, %v3072_v61 }
 0x1ea   :  { %2895 = vmatprep.subr.msk.bf16.mxu1 %vm1663_vm4, %v3212_v63  ;;  %v1237_v10 = vmax.f32 %v3787_v6, %v1211_v5 }
 0x1ec   :  { %v3980_v24 = vpack.c.bf16 %v1237_v10, %v1236_v18 }
 0x1ed   :  { %1702 = vmatpush1.bf16.msra.mxu1 %v1665_v8 }
 0x1ee   :  { %v3075_v17 = vpop.permute.xlu0 %3074  ;;  %1762 = vmatprep.subr.bf16.mxu1 %v3320_v22  ;;  %v1263_v6 = vrot.slane %v3980_v24, 4 }
 0x1ef   :  { %v3077_v49 = vunpack.i.h.bf16 %v3075_v17  ;;  %v3076_v7 = vunpack.i.l.bf16 %v3075_v17 }
 0x1f1   :  { %v1212_v20 = vsel %vm1209_vm5, %v3076_v7, %v3077_v49 }
 0x1f2   :  { %v1238_v32 = vmax.f32 %v3795_v56, %v1212_v20 }
 0x1f6   :  { %v3080_v13 = vpop.permute.xlu1 %3079 }
 0x1f7   :  { %v3082_v15 = vunpack.i.h.bf16 %v3080_v13  ;;  %v3081_v16 = vunpack.i.l.bf16 %v3080_v13 }
 0x1f9   :  { %v1213_v41 = vsel %vm1209_vm5, %v3081_v16, %v3082_v15 }
 0x1fa   :  { %v1239_v23 = vmax.f32 %v3803_v40, %v1213_v41 }
 0x1fc   :  { %v3982_v26 = vpack.c.bf16 %v1239_v23, %v1238_v32 }
 0x1fe   :  { %1287 = vrot.lane.b32.xlu0 %v3982_v26, %s3318_s21  ;;  %v1264_v43 = vrot.slane %v3982_v26, 4  ;;  %v3085_v44 = vpop.permute.xlu0 %3084 }
 0x1ff   :  { %v3087_v56 = vunpack.i.h.bf16 %v3085_v44  ;;  %v3086_v40 = vunpack.i.l.bf16 %v3085_v44 }
 0x200   :  { %v1265_v58 = vsel %vm1262_vm6, %v1263_v6, %v1264_v43 }
 0x201   :  { %1274 = vrot.lane.b32.xlu1 %v1265_v58, %s3322_s0  ;;  %v1214_v29 = vsel %vm1209_vm5, %v3086_v40, %v3087_v56 }
 0x202   :  { %v1240_v33 = vmax.f32 %v3811_v60, %v1214_v29 }
 0x206   :  { %v3090_v11 = vpop.permute.xlu1 %3089 }
 0x207   :  { %v3092_v30 = vunpack.i.h.bf16 %v3090_v11  ;;  %v3091_v25 = vunpack.i.l.bf16 %v3090_v11  ;;  %v3215_v11 = vld [vmem:[%s4525_s3 + $0x8] ss:$12 sps:$4 sm:$0xff]  }
 0x209   :  { %v1215_v31 = vsel %vm1209_vm5, %v3091_v25, %v3092_v30  ;;  %v3217_v25 = vld [vmem:[%s4525_s3 + $0x38] ss:$12 sps:$4 sm:$0xff]  }
 0x20a   :  { %v1241_v35 = vmax.f32 %v3819_v9, %v1215_v31 }
 0x20c   :  { %v3994_v34 = vpack.c.bf16 %v1241_v35, %v1240_v33  ;;  %v3219_v35 = vld [vmem:[%s4525_s3 + $0x68] ss:$12 sps:$4 sm:$0xff]  }
 0x20e   :  { %1289 = vrot.lane.b32.xlu0 %v3994_v34, %s3318_s21  ;;  %v1266_v36 = vrot.slane %v3994_v34, 4  ;;  %v3095_v45 = vpop.permute.xlu0 %3094 }
 0x20f   :  { %v3097_v47 = vunpack.i.h.bf16 %v3095_v45  ;;  %v3096_v48 = vunpack.i.l.bf16 %v3095_v45 }
 0x210   :  { %v1267_v46 = vsel %vm1262_vm6, %v1264_v43, %v1266_v36 }
 0x211   :  { %1276 = vrot.lane.b32.xlu1 %v1267_v46, %s3322_s0  ;;  %v1216_v51 = vsel %vm1209_vm5, %v3096_v48, %v3097_v47  ;;  %v3220_v46 = vld [vmem:[%s4525_s3 + $0x80] ss:$12 sps:$4 sm:$0xff]   ;;  %v3222_v47 = vld [vmem:[%s4525_s3 + $0xb0] ss:$12 sps:$4 sm:$0xff]  }
 0x212   :  { %v1242_v53 = vmax.f32 %v3827_v28, %v1216_v51  ;;  %v3223_v51 = vld [vmem:[%s4525_s3 + $0xc8] ss:$12 sps:$4 sm:$0xff]  }
 0x216   :  { %v3100_v37 = vpop.permute.xlu1 %3099 }
 0x217   :  { %v3102_v60 = vunpack.i.h.bf16 %v3100_v37  ;;  %v3101_v52 = vunpack.i.l.bf16 %v3100_v37 }
 0x219   :  { %v1217_v9 = vsel %vm1209_vm5, %v3101_v52, %v3102_v60 }
 0x21a   :  { %v1243_v54 = vmax.f32 %v3835_v50, %v1217_v9  ;;  %v3224_v9 = vld [vmem:[%s4525_s3 + $0xe0] ss:$12 sps:$4 sm:$0xff]  }
 0x21c   :  { %v4005_v55 = vpack.c.bf16 %v1243_v54, %v1242_v53  ;;  %v3225_v53 = vld [vmem:[%s4525_s3 + $0xf8] ss:$12 sps:$4 sm:$0xff]  }
 0x21e   :  { %1291 = vrot.lane.b32.xlu0 %v4005_v55, %s3318_s21  ;;  %v1268_v57 = vrot.slane %v4005_v55, 4  ;;  %v3105_v59 = vpop.permute.xlu0 %3104 }
 0x21f   :  { %v3107_v61 = vunpack.i.h.bf16 %v3105_v59  ;;  %v3106_v62 = vunpack.i.l.bf16 %v3105_v59  ;;  %v3227_v59 = vld [vmem:[%s4525_s3 + $0x128] ss:$12 sps:$4 sm:$0xff]  }
 0x220   :  { %v1269_v14 = vsel %vm1262_vm6, %v1266_v36, %v1268_v57 }
 0x221   :  { %1278 = vrot.lane.b32.xlu1 %v1269_v14, %s3322_s0  ;;  %v1218_v63 = vsel %vm1209_vm5, %v3106_v62, %v3107_v61  ;;  %v3228_v62 = vld [vmem:[%s4525_s3 + $0x140] ss:$12 sps:$4 sm:$0xff]  }
 0x222   :  { %v1244_v2 = vmax.f32 %v3843_v19, %v1218_v63 }
 0x226   :  { %v3110_v17 = vpop.permute.xlu1 %3109 }
 0x227   :  { %v3112_v28 = vunpack.i.h.bf16 %v3110_v17  ;;  %v3111_v0 = vunpack.i.l.bf16 %v3110_v17  ;;  %v3229_v17 = vld [vmem:[%s4525_s3 + $0x158] ss:$12 sps:$4 sm:$0x1f]  }
 0x229   :  { %v1219_v50 = vsel %vm1209_vm5, %v3111_v0, %v3112_v28 }
 0x22a   :  { %v1245_v3 = vmax.f32 %v3851_v21, %v1219_v50 }
 0x22c   :  { %v4016_v5 = vpack.c.bf16 %v1245_v3, %v1244_v2 }
 0x22e   :  { %1293 = vrot.lane.b32.xlu0 %v4016_v5, %s3318_s21  ;;  %v1270_v49 = vrot.slane %v4016_v5, 4  ;;  %v3115_v7 = vpop.permute.xlu0 %3114 }
 0x22f   :  { %v3117_v4 = vunpack.i.h.bf16 %v3115_v7  ;;  %v3116_v10 = vunpack.i.l.bf16 %v3115_v7 }
 0x230   :  { %v1271_v8 = vsel %vm1262_vm6, %v1268_v57, %v1270_v49 }
 0x231   :  { %1280 = vrot.lane.b32.xlu1 %v1271_v8, %s3322_s0  ;;  %v1220_v20 = vsel %vm1209_vm5, %v3116_v10, %v3117_v4  ;;  %v4151_v8 = vld [vmem:[%s4526_s4] sm:$0x7]  ;;  %v3231_v4 = vld [vmem:[%s4527_s5 + $0x58] sm:$0xff]   ;;  %s3323_s4 = smov 64  }
 0x232   :  { %v1246_v16 = vmax.f32 %v3859_v38, %v1220_v20  ;;  %v4160_v10 = vrot.slane %v4151_v8, %v793_v39  ;;  %v3238_v20 = vld [vmem:[%s4527_s5 + $0xa0] sm:$0xff]   ;;  %v3239_v39 = vld [vmem:[%s4527_s5 + $0xa8] sm:$0xff]  }
 0x236   :  { %v3120_v13 = vpop.permute.xlu1 %3119 }
 0x237   :  { %v3122_v19 = vunpack.i.h.bf16 %v3120_v13  ;;  %v3121_v15 = vunpack.i.l.bf16 %v3120_v13  ;;  %v3232_v13 = vld [vmem:[%s4527_s5 + $0x60] sm:$0xff]  }
 0x239   :  { %v1221_v21 = vsel %vm1209_vm5, %v3121_v15, %v3122_v19  ;;  %v4171_v19 = vrot.slane %v4151_v8, %v797_v42 }
 0x23a   :  { %v1247_v18 = vmax.f32 %v3879_v1, %v1221_v21 }
 0x23c   :  { %v4027_v41 = vpack.c.bf16 %v1247_v18, %v1246_v16  ;;  %v3233_v18 = vld [vmem:[%s4527_s5 + $0x68] sm:$0xff]  }
 0x23e   :  { %v3125_v32 = vpop.permute.xlu0 %3124  ;;  %1295 = vrot.lane.b32.xlu0 %v4027_v41, %s3318_s21  ;;  %v1272_v23 = vrot.slane %v4027_v41, 4 }
 0x23f   :  { %v3127_v6 = vunpack.i.h.bf16 %v3125_v32  ;;  %v3126_v43 = vunpack.i.l.bf16 %v3125_v32 }
 0x240   :  { %v1273_v44 = vsel %vm1262_vm6, %v1270_v49, %v1272_v23 }
 0x241   :  { %1282 = vrot.lane.b32.xlu1 %v1273_v44, %s3322_s0  ;;  %v1222_v58 = vsel %vm1209_vm5, %v3126_v43, %v3127_v6  ;;  %v3241_v6 = vld [vmem:[%s4527_s5 + $0xb0] sm:$0xff]  }
 0x242   :  { %v1248_v38 = vmax.f32 %v3902_v27, %v1222_v58  ;;  %v3216_v27 = vld [vmem:[%s4525_s3 + $0x20] ss:$12 sps:$4 sm:$0xff]  }
 0x244   :  { %v1255_v56 = vpack.c.bf16 %v1248_v38, %v1248_v38  ;;  %v3234_v38 = vld [vmem:[%s4527_s5 + $0x70] sm:$0xff]  }
 0x245   :  { %1284 = vrot.lane.b32.xlu1 %v1272_v23, %s3322_s0 }
 0x246   :  { %1297 = vrot.lane.b32.xlu0 %v1255_v56, %s3318_s21 }
 0x270   :  { %v1288_v1 = vpop.permute.xlu0 %1287 }
 0x273   :  { %v1275_v40 = vpop.permute.xlu1 %1274 }
 0x274   :  { %v4042_v29 = vsel %vm711_vm1, %v1275_v40, %v1288_v1  ;;  %v4046_v30 = vsel %vm1299_vm7, %v3980_v24, %v1275_v40  ;;  %v3218_v24 = vld [vmem:[%s4525_s3 + $0x50] ss:$12 sps:$4 sm:$0xff]  }
 0x275   :  { %2896 = vmatprep.mubr.msk.bf16.mxu1 %vm1650_vm8, %v4042_v29 }
 0x276   :  { %1706 = vmatmul.mubr.bf16.vlgmr.msra.gmra.mrb[0].mxu1 %v4046_v30 }
 0x277   :  { %1763 = vmatpush1.bf16.msra.mxu1 %v3215_v11 }
 0x278   :  { %1764 = vmatprep.subr.bf16.mxu1 %v3320_v22 }
 0x27b   :  { %1765 = vmatpush1.bf16.msra.mxu1 %v3216_v27 }
 0x27c   :  { %1766 = vmatprep.subr.bf16.mxu1 %v3320_v22 }
 0x27f   :  { %1767 = vmatpush1.bf16.msra.mxu1 %v3217_v25 }
 0x280   :  { %1768 = vmatprep.subr.bf16.mxu1 %v3320_v22  ;;  %v1290_v31 = vpop.permute.xlu0 %1289 }
 0x283   :  { %v1277_v33 = vpop.permute.xlu1 %1276  ;;  %1769 = vmatpush1.bf16.msra.mxu1 %v3218_v24 }
 0x284   :  { %v4067_v36 = vsel %vm711_vm1, %v1277_v33, %v1290_v31  ;;  %v4071_v45 = vsel %vm1299_vm7, %v3982_v26, %v1277_v33  ;;  %1770 = vmatprep.subr.bf16.mxu1 %v3320_v22  ;;  %v3221_v26 = vld [vmem:[%s4525_s3 + $0x98] ss:$12 sps:$4 sm:$0xff]   ;;  %v3237_v31 = vld [vmem:[%s4527_s5 + $0x88] sm:$0xff]  }
 0x285   :  { %2897 = vmatprep.mubr.msk.bf16.mxu1 %vm1650_vm8, %v4067_v36 }
 0x286   :  { %1716 = vmatmul.mubr.bf16.gmra.mrb[4].mxu1 %v4071_v45 }
 0x287   :  { %1771 = vmatpush1.bf16.msra.mxu1 %v3219_v35 }
 0x288   :  { %1772 = vmatprep.subr.bf16.mxu1 %v3320_v22 }
 0x28b   :  { %1773 = vmatpush1.bf16.msra.mxu1 %v3220_v46 }
 0x28c   :  { %1774 = vmatprep.subr.bf16.mxu1 %v3320_v22 }
 0x28f   :  { %1775 = vmatpush1.bf16.msra.mxu1 %v3221_v26 }
 0x290   :  { %1776 = vmatprep.subr.bf16.mxu1 %v3320_v22  ;;  %v1292_v48 = vpop.permute.xlu0 %1291 }
 0x293   :  { %v1279_v37 = vpop.permute.xlu1 %1278  ;;  %1777 = vmatpush1.bf16.msra.mxu1 %v3222_v47 }
 0x294   :  { %v1329_v60 = vsel %vm711_vm1, %v1279_v37, %v1292_v48  ;;  %v1310_v52 = vsel %vm1299_vm7, %v3994_v34, %v1279_v37  ;;  %1778 = vmatprep.subr.bf16.mxu1 %v3320_v22  ;;  %v3226_v34 = vld [vmem:[%s4525_s3 + $0x110] ss:$12 sps:$4 sm:$0xff]  }
 0x295   :  { %2898 = vmatprep.mubr.msk.bf16.mxu1 %vm1650_vm8, %v1329_v60  ;;  %v3240_v48 = vld [vmem:[%s4527_s5 + $0x90] sm:$0xff]  }
 0x296   :  { %1726 = vmatmul.mubr.bf16.gmra.mrb[8].mxu1 %v1310_v52 }
 0x297   :  { %1779 = vmatpush1.bf16.msra.mxu1 %v3223_v51 }
 0x298   :  { %1780 = vmatprep.subr.bf16.mxu1 %v3320_v22 }
 0x29b   :  { %1781 = vmatpush1.bf16.msra.mxu1 %v3224_v9 }
 0x29c   :  { %1782 = vmatprep.subr.bf16.mxu1 %v3320_v22 }
 0x29f   :  { %1783 = vmatpush1.bf16.msra.mxu1 %v3225_v53 }
 0x2a0   :  { %1784 = vmatprep.subr.bf16.mxu1 %v3320_v22  ;;  %v1294_v54 = vpop.permute.xlu0 %1293 }
 0x2a3   :  { %v1281_v57 = vpop.permute.xlu1 %1280  ;;  %1785 = vmatpush1.bf16.msra.mxu1 %v3226_v34 }
 0x2a4   :  { %v1331_v14 = vsel %vm711_vm1, %v1281_v57, %v1294_v54  ;;  %v1314_v61 = vsel %vm1299_vm7, %v4005_v55, %v1281_v57  ;;  %1786 = vmatprep.subr.bf16.mxu1 %v3320_v22  ;;  %v1671_v55 = vsel %vm1663_vm4, %v3229_v17, 0 }
 0x2a5   :  { %2899 = vmatprep.mubr.msk.bf16.mxu1 %vm1650_vm8, %v1331_v14 }
 0x2a6   :  { %1736 = vmatmul.mubr.bf16.gmra.mrb[12].mxu1 %v1314_v61 }
 0x2a7   :  { %1787 = vmatpush1.bf16.msra.mxu1 %v3227_v59 }
 0x2a8   :  { %1788 = vmatprep.subr.bf16.mxu1 %v3320_v22 }
 0x2ab   :  { %1789 = vmatpush1.bf16.msra.mxu1 %v3228_v62 }
 0x2ac   :  { %1790 = vmatprep.subr.bf16.mxu1 %v3320_v22 }
 0x2af   :  { %1791 = vmatpush1.bf16.msra.mxu1 %v1671_v55 }
 0x2b0   :  { %2323 = vmatprep.subr.bf16.mxu1 %v3320_v22  ;;  %v1296_v63 = vpop.permute.xlu0 %1295 }
 0x2b3   :  { %v1283_v28 = vpop.permute.xlu1 %1282 }
 0x2b4   :  { %v1333_v0 = vsel %vm711_vm1, %v1283_v28, %v1296_v63  ;;  %v1318_v50 = vsel %vm1299_vm7, %v4016_v5, %v1283_v28  ;;  %v3230_v5 = vld [vmem:[%s4527_s5 + $0x50] sm:$0xff]  }
 0x2b5   :  { %2900 = vmatprep.mubr.msk.bf16.mxu1 %vm1650_vm8, %v1333_v0  ;;  %2118 = vmatpush1.bf16.msra.mxu0 %v3230_v5 }
 0x2b6   :  { %1746 = vmatmul.mubr.bf16.gmra.mrb[16].mxu1 %v1318_v50  ;;  %2119 = vmatprep.subr.bf16.mxu0 %v3320_v22 }
 0x2b7   :  { %v1285_v2 = vpop.permute.xlu1 %1284 }
 0x2b8   :  { %v1298_v3 = vpop.permute.xlu0 %1297  ;;  %v1322_v7 = vsel %vm1299_vm7, %v4027_v41, %v1285_v2 }
 0x2b9   :  { %v1335_v49 = vsel %vm711_vm1, %v1285_v2, %v1298_v3  ;;  %2120 = vmatpush1.bf16.msra.mxu0 %v3231_v4 }
 0x2ba   :  { %2901 = vmatprep.mubr.msk.bf16.mxu1 %vm1650_vm8, %v1335_v49  ;;  %2121 = vmatprep.subr.bf16.mxu0 %v3320_v22 }
 0x2bd   :  { %2122 = vmatpush1.bf16.msra.mxu0 %v3232_v13 }
 0x2be   :  { %1756 = vmatmul.mubr.bf16.gmra.mrb[20].mxu1 %v1322_v7  ;;  %2123 = vmatprep.subr.bf16.mxu0 %v3320_v22 }
 0x2bf   :  { %2902 = vmatprep.mubr.msk.bf16.mxu1 %vm1650_vm8, %v4042_v29  ;;  %v3235_v29 = vld [vmem:[%s4527_s5 + $0x78] sm:$0xff]  }
 0x2c1   :  { %2124 = vmatpush1.bf16.msra.mxu0 %v3233_v18 }
 0x2c2   :  { %2125 = vmatprep.subr.bf16.mxu0 %v3320_v22 }
 0x2c5   :  { %2126 = vmatpush1.bf16.msra.mxu0 %v3234_v38 }
 0x2c6   :  { %1795 = vmatmul.mubr.bf16.vlgmr.msra.gmra.mrb[24].mxu1 %v4046_v30  ;;  %2127 = vmatprep.subr.bf16.mxu0 %v3320_v22  ;;  %v3236_v30 = vld [vmem:[%s4527_s5 + $0x80] sm:$0xff]  }
 0x2c7   :  { %2903 = vmatprep.mubr.msk.bf16.mxu1 %vm1650_vm8, %v4067_v36  ;;  %2324 = vmatpush1.bf16.msra.mxu1 %v3238_v20 }
 0x2c8   :  { %2325 = vmatprep.subr.bf16.mxu1 %v3320_v22 }
 0x2c9   :  { %2128 = vmatpush1.bf16.msra.mxu0 %v3235_v29 }
 0x2ca   :  { %2129 = vmatprep.subr.bf16.mxu0 %v3320_v22 }
 0x2cb   :  { %2326 = vmatpush1.bf16.msra.mxu1 %v3239_v39 }
 0x2cc   :  { %2327 = vmatprep.subr.bf16.mxu1 %v3320_v22 }
 0x2cd   :  { %2130 = vmatpush1.bf16.msra.mxu0 %v3236_v30 }
 0x2ce   :  { %1803 = vmatmul.mubr.bf16.gmra.mrb[28].mxu1 %v4071_v45  ;;  %2131 = vmatprep.subr.bf16.mxu0 %v3320_v22 }
 0x2cf   :  { %2904 = vmatprep.mubr.msk.bf16.mxu1 %vm1650_vm8, %v1329_v60  ;;  %2328 = vmatpush1.bf16.msra.mxu1 %v3241_v6 }
 0x2d0   :  { %2329 = vmatprep.subr.bf16.mxu1 %v3320_v22 }
 0x2d1   :  { %2132 = vmatpush1.bf16.msra.mxu0 %v3237_v31  ;;  %v1408_v31 = vsub.s32 2, %v3411_v12  ;;  %v3244_v12 = vld [vmem:[%s4527_s5 + $0xc0] sm:$0xff]  }
 0x2d2   :  { %2133 = vmatprep.subr.bf16.mxu0 %v3320_v22 }
 0x2d5   :  { %2134 = vmatpush1.bf16.msra.mxu0 %v3240_v48 }
 0x2d6   :  { %1811 = vmatmul.mubr.bf16.gmra.mrb[32].mxu1 %v1310_v52  ;;  %2135 = vmatprep.subr.bf16.mxu0 %v3320_v22 }
 0x2d7   :  { %2905 = vmatprep.mubr.msk.bf16.mxu1 %vm1650_vm8, %v1331_v14 }
 0x2de   :  { %1819 = vmatmul.mubr.bf16.gmra.mrb[36].mxu1 %v1314_v61 }
 0x2df   :  { %2906 = vmatprep.mubr.msk.bf16.mxu1 %vm1650_vm8, %v1333_v0 }
 0x2e6   :  { %1827 = vmatmul.mubr.bf16.gmra.mrb[40].mxu1 %v1318_v50 }
 0x2e7   :  { %2907 = vmatprep.mubr.msk.bf16.mxu1 %vm1650_vm8, %v1335_v49 }
 0x2ee   :  { %1835 = vmatmul.mubr.bf16.gmra.mrb[44].mxu1 %v1322_v7 }
 0x349   :  { %v1707_v15 = vpop.f32.mrb[0].mxu1 }
 0x34a   :  { %v1708_v21 = vadd.f32 %v1707_v15, %v4160_v10  ;;  %v1709_v16 = vpop.f32.mrb[1].mxu1 }
 0x34b   :  { %v1710_v42 = vadd.f32 %v1709_v16, %v4171_v19  ;;  %v1711_v41 = vpop.f32.mrb[2].mxu1 }
 0x34c   :  { %v1712_v32 = vadd.f32 %v1711_v41, %v4160_v10  ;;  %v1713_v23 = vpop.f32.mrb[3].mxu1  ;;  %v1841_v44 = vmax.f32 %v1708_v21, 0.0 }
 0x34d   :  { %v1714_v43 = vadd.f32 %v1713_v23, %v4171_v19  ;;  %v1842_v56 = vmax.f32 %v1710_v42, 0.0 }
 0x34e   :  { %v1844_v58 = vmax.f32 %v1712_v32, 0.0 }
 0x34f   :  { %v1845_v1 = vmax.f32 %v1714_v43, 0.0 }
 0x350   :  { %v4194_v40 = vmax.f32 %v1841_v44, %v1844_v58 }
 0x351   :  { %v4196_v11 = vmax.f32 %v1842_v56, %v1845_v1 }
 0x359   :  { %v1717_v27 = vpop.f32.mrb[4].mxu1 }
 0x35a   :  { %v1718_v25 = vadd.f32 %v1717_v27, %v4160_v10  ;;  %v1719_v24 = vpop.f32.mrb[5].mxu1 }
 0x35b   :  { %v1720_v33 = vadd.f32 %v1719_v24, %v4171_v19  ;;  %v1721_v35 = vpop.f32.mrb[6].mxu1 }
 0x35c   :  { %v1722_v36 = vadd.f32 %v1721_v35, %v4160_v10  ;;  %v1723_v45 = vpop.f32.mrb[7].mxu1  ;;  %v1847_v26 = vmax.f32 %v1718_v25, 0.0 }
 0x35d   :  { %v1724_v46 = vadd.f32 %v1723_v45, %v4171_v19  ;;  %v1848_v37 = vmax.f32 %v1720_v33, 0.0 }
 0x35e   :  { %v1850_v47 = vmax.f32 %v1722_v36, 0.0  ;;  %v4250_v36 = vrot.slane %v4151_v8, %v1408_v31 }
 0x35f   :  { %v1851_v51 = vmax.f32 %v1724_v46, 0.0 }
 0x360   :  { %v4219_v60 = vmax.f32 %v1847_v26, %v1850_v47  ;;  %v3243_v26 = vld [vmem:[%s4527_s5 + $0x98] sm:$0xff]  }
 0x361   :  { %v4221_v52 = vmax.f32 %v1848_v37, %v1851_v51  ;;  %2136 = vmatpush1.bf16.msra.mxu0 %v3243_v26 }
 0x362   :  { %2220 = vmatprep.subr.bf16.mxu0 %v3320_v22 }
 0x369   :  { %v1727_v9 = vpop.f32.mrb[8].mxu1 }
 0x36a   :  { %v1728_v53 = vadd.f32 %v1727_v9, %v4160_v10  ;;  %v1729_v34 = vpop.f32.mrb[9].mxu1 }
 0x36b   :  { %v1730_v54 = vadd.f32 %v1729_v34, %v4171_v19  ;;  %v1731_v57 = vpop.f32.mrb[10].mxu1 }
 0x36c   :  { %v1732_v59 = vadd.f32 %v1731_v57, %v4160_v10  ;;  %v1733_v14 = vpop.f32.mrb[11].mxu1  ;;  %v1853_v62 = vmax.f32 %v1728_v53, 0.0  ;;  %v3245_v53 = vld [vmem:[%s4527_s5 + $0xc8] sm:$0xff]  }
 0x36d   :  { %v1734_v61 = vadd.f32 %v1733_v14, %v4171_v19  ;;  %v1854_v55 = vmax.f32 %v1730_v54, 0.0 }
 0x36e   :  { %v1856_v17 = vmax.f32 %v1732_v59, 0.0 }
 0x36f   :  { %v1857_v63 = vmax.f32 %v1734_v61, 0.0 }
 0x370   :  { %v4228_v28 = vmax.f32 %v1853_v62, %v1856_v17  ;;  %v3246_v17 = vld [vmem:[%s4527_s5 + $0xd0] sm:$0xff]  }
 0x371   :  { %v4230_v0 = vmax.f32 %v1854_v55, %v1857_v63 }
 0x379   :  { %v1737_v50 = vpop.f32.mrb[12].mxu1 }
 0x37a   :  { %v1738_v2 = vadd.f32 %v1737_v50, %v4160_v10  ;;  %v1739_v3 = vpop.f32.mrb[13].mxu1 }
 0x37b   :  { %v1740_v49 = vadd.f32 %v1739_v3, %v4171_v19  ;;  %v1741_v7 = vpop.f32.mrb[14].mxu1  ;;  %v3248_v3 = vld [vmem:[%s4527_s5 + $0xd8] sm:$0xff]  }
 0x37c   :  { %v1742_v5 = vadd.f32 %v1741_v7, %v4160_v10  ;;  %v1743_v4 = vpop.f32.mrb[15].mxu1  ;;  %v1859_v20 = vmax.f32 %v1738_v2, 0.0 }
 0x37d   :  { %v1744_v13 = vadd.f32 %v1743_v4, %v4171_v19  ;;  %v1860_v15 = vmax.f32 %v1740_v49, 0.0 }
 0x37e   :  { %v1862_v39 = vmax.f32 %v1742_v5, 0.0 }
 0x37f   :  { %v1863_v21 = vmax.f32 %v1744_v13, 0.0 }
 0x380   :  { %v4236_v16 = vmax.f32 %v1859_v20, %v1862_v39  ;;  %v3250_v39 = vld [vmem:[%s4527_s5 + $0xe0] sm:$0xff]  }
 0x381   :  { %v4238_v18 = vmax.f32 %v1860_v15, %v1863_v21 }
 0x389   :  { %v1747_v42 = vpop.f32.mrb[16].mxu1 }
 0x38a   :  { %v1748_v41 = vadd.f32 %v1747_v42, %v4160_v10  ;;  %v1749_v32 = vpop.f32.mrb[17].mxu1 }
 0x38b   :  { %v1750_v23 = vadd.f32 %v1749_v32, %v4171_v19  ;;  %v1751_v6 = vpop.f32.mrb[18].mxu1  ;;  %v3252_v32 = vld [vmem:[%s4527_s5 + $0xe8] sm:$0xff]  }
 0x38c   :  { %v1752_v43 = vadd.f32 %v1751_v6, %v4160_v10  ;;  %v1753_v44 = vpop.f32.mrb[19].mxu1  ;;  %v1865_v38 = vmax.f32 %v1748_v41, 0.0  ;;  %v3242_v10 = vld [vmem:[%s4527_s5 + $0xb8] sm:$0xff]  }
 0x38d   :  { %v1754_v58 = vadd.f32 %v1753_v44, %v4171_v19  ;;  %v1866_v1 = vmax.f32 %v1750_v23, 0.0  ;;  %2330 = vmatpush1.bf16.msra.mxu1 %v3242_v10 }
 0x38e   :  { %v1868_v56 = vmax.f32 %v1752_v43, 0.0  ;;  %2331 = vmatprep.subr.bf16.mxu1 %v3320_v22 }
 0x38f   :  { %v1869_v29 = vmax.f32 %v1754_v58, 0.0 }
 0x390   :  { %v4244_v30 = vmax.f32 %v1865_v38, %v1868_v56 }
 0x391   :  { %v4246_v27 = vmax.f32 %v1866_v1, %v1869_v29  ;;  %v1757_v25 = vpop.f32.mrb[20].mxu1  ;;  %2332 = vmatpush1.bf16.msra.mxu1 %v3244_v12 }
 0x392   :  { %v1758_v24 = vpop.f32.mrb[21].mxu1  ;;  %2333 = vmatprep.subr.bf16.mxu1 %v3320_v22 }
 0x393   :  { %v1759_v33 = vpop.f32.mrb[22].mxu1 }
 0x394   :  { %v1760_v35 = vpop.f32.mrb[23].mxu1 }
 0x395   :  { %2334 = vmatpush1.bf16.msra.mxu1 %v3245_v53 }
 0x396   :  { %2335 = vmatprep.subr.bf16.mxu1 %v3320_v22 }
 0x399   :  { %v1796_v19 = vpop.f32.mrb[24].mxu1  ;;  %2336 = vmatpush1.bf16.msra.mxu1 %v3246_v17 }
 0x39a   :  { %v1797_v45 = vadd.f32 %v1796_v19, %v4250_v36  ;;  %v1798_v46 = vpop.f32.mrb[25].mxu1  ;;  %2337 = vmatprep.subr.bf16.mxu1 %v3320_v22 }
 0x39b   :  { %v1799_v47 = vpop.f32.mrb[26].mxu1 }
 0x39c   :  { %v1800_v8 = vadd.f32 %v1799_v47, %v4250_v36  ;;  %v1801_v48 = vpop.f32.mrb[27].mxu1  ;;  %v1843_v37 = vmax.f32 %v1797_v45, 0.0 }
 0x39d   :  { %2338 = vmatpush1.bf16.msra.mxu1 %v3248_v3 }
 0x39e   :  { %v1846_v51 = vmax.f32 %v1800_v8, 0.0  ;;  %2339 = vmatprep.subr.bf16.mxu1 %v3320_v22 }
 0x3a0   :  { %v1873_v9 = vmax.f32 %v1843_v37, %v1846_v51 }
 0x3a1   :  { %v1804_v34 = vpop.f32.mrb[28].mxu1  ;;  %2340 = vmatpush1.bf16.msra.mxu1 %v3250_v39 }
 0x3a2   :  { %v1805_v54 = vadd.f32 %v1804_v34, %v4250_v36  ;;  %v1806_v57 = vpop.f32.mrb[29].mxu1  ;;  %v3128_v59 = vpack.i.bf16 %v1873_v9, %v4196_v11  ;;  %2341 = vmatprep.subr.bf16.mxu1 %v3320_v22 }
 0x3a3   :  { %v1807_v14 = vpop.f32.mrb[30].mxu1 }
 0x3a4   :  { %v1808_v61 = vadd.f32 %v1807_v14, %v4250_v36  ;;  %v1809_v62 = vpop.f32.mrb[31].mxu1  ;;  %3129 = vrot.lane.b32.xlu1 %v3128_v59, %s3323_s4  ;;  %v1849_v55 = vmax.f32 %v1805_v54, 0.0 }
 0x3a5   :  { %2342 = vmatpush1.bf16.msra.mxu1 %v3252_v32 }
 0x3a6   :  { %v1852_v63 = vmax.f32 %v1808_v61, 0.0  ;;  %2536 = vmatprep.subr.bf16.mxu1 %v3320_v22 }
 0x3a8   :  { %v1876_v50 = vmax.f32 %v1849_v55, %v1852_v63 }
 0x3a9   :  { %v1812_v2 = vpop.f32.mrb[32].mxu1 }
 0x3aa   :  { %v1813_v49 = vadd.f32 %v1812_v2, %v4250_v36  ;;  %v1814_v7 = vpop.f32.mrb[33].mxu1  ;;  %v3133_v5 = vpack.i.bf16 %v1876_v50, %v4221_v52  ;;  %v3247_v2 = vld [vmem:[%s4527_s5] sm:$0xff]  }
 0x3ab   :  { %v1815_v4 = vpop.f32.mrb[34].mxu1 }
 0x3ac   :  { %v1816_v13 = vadd.f32 %v1815_v4, %v4250_v36  ;;  %v1817_v20 = vpop.f32.mrb[35].mxu1  ;;  %3134 = vrot.lane.b32.xlu0 %v3133_v5, %s3323_s4  ;;  %v1855_v15 = vmax.f32 %v1813_v49, 0.0  ;;  %v3251_v49 = vld [vmem:[%s4527_s5 + $0x10] sm:$0xff]  }
 0x3ae   :  { %v1858_v21 = vmax.f32 %v1816_v13, 0.0 }
 0x3b0   :  { %v1879_v42 = vmax.f32 %v1855_v15, %v1858_v21  ;;  %v3253_v21 = vld [vmem:[%s4527_s5 + $0x18] sm:$0xff]  }
 0x3b1   :  { %v1820_v41 = vpop.f32.mrb[36].mxu1 }
 0x3b2   :  { %v1821_v23 = vadd.f32 %v1820_v41, %v4250_v36  ;;  %v1822_v6 = vpop.f32.mrb[37].mxu1  ;;  %v3138_v43 = vpack.i.bf16 %v1879_v42, %v4230_v0 }
 0x3b3   :  { %v1823_v44 = vpop.f32.mrb[38].mxu1 }
 0x3b4   :  { %v1824_v58 = vadd.f32 %v1823_v44, %v4250_v36  ;;  %v1825_v38 = vpop.f32.mrb[39].mxu1  ;;  %3139 = vrot.lane.b32.xlu1 %v3138_v43, %s3323_s4  ;;  %v1861_v56 = vmax.f32 %v1821_v23, 0.0  ;;  %v3257_v44 = vld [vmem:[%s4527_s5 + $0x28] sm:$0xff]  }
 0x3b5   :  { %v3258_v38 = vld [vmem:[%s4527_s5 + $0x150] sm:$0xff]  }
 0x3b6   :  { %v1864_v1 = vmax.f32 %v1824_v58, 0.0 }
 0x3b8   :  { %v1882_v29 = vmax.f32 %v1861_v56, %v1864_v1  ;;  %v3260_v56 = vld [vmem:[%s4527_s5 + $0x158] sm:$0xff]  }
 0x3b9   :  { %v1828_v25 = vpop.f32.mrb[40].mxu1  ;;  %v3261_v1 = vld [vmem:[%s4527_s5 + $0x38] sm:$0xff]  }
 0x3ba   :  { %v1829_v24 = vadd.f32 %v1828_v25, %v4250_v36  ;;  %v1830_v31 = vpop.f32.mrb[41].mxu1  ;;  %v3143_v33 = vpack.i.bf16 %v1882_v29, %v4238_v18  ;;  %v3262_v29 = vld [vmem:[%s4527_s5 + $0x160] sm:$0xff]  }
 0x3bb   :  { %v1831_v35 = vpop.f32.mrb[42].mxu1  ;;  %v3263_v25 = vld [vmem:[%s4527_s5 + $0x40] sm:$0xff]   ;;  %v3265_v31 = vld [vmem:[%s4527_s5 + $0x48] sm:$0xff]  }
 0x3bc   :  { %v1832_v10 = vadd.f32 %v1831_v35, %v4250_v36  ;;  %v1833_v19 = vpop.f32.mrb[43].mxu1  ;;  %3144 = vrot.lane.b32.xlu0 %v3143_v33, %s3323_s4  ;;  %v1867_v45 = vmax.f32 %v1829_v24, 0.0  ;;  %v3264_v24 = vld [vmem:[%s4527_s5 + $0x168] sm:$0xff]   ;;  %v3266_v33 = vld [vmem:[%s4527_s5 + $0x170] sm:$0xff]  }
 0x3bd   :  { %v3267_v35 = vld [vmem:[%s4527_s5 + $0xf0] sm:$0xff]   ;;  %v3268_v19 = vld [vmem:[%s4527_s5 + $0x178] sm:$0xff]  }
 0x3be   :  { %v1870_v46 = vmax.f32 %v1832_v10, 0.0 }
 0x3c0   :  { %v1885_v26 = vmax.f32 %v1867_v45, %v1870_v46  ;;  %v3269_v46 = vld [vmem:[%s4527_s5 + $0xf8] sm:$0xff]  }
 0x3c1   :  { %v1836_v12 = vpop.f32.mrb[44].mxu1 }
 0x3c2   :  { %v1837_v47 = vpop.f32.mrb[45].mxu1  ;;  %v3148_v8 = vpack.i.bf16 %v1885_v26, %v4246_v27  ;;  %v3270_v26 = vld [vmem:[%s4527_s5 + $0x180] sm:$0xff]  }
 0x3c3   :  { %v1838_v48 = vpop.f32.mrb[46].mxu1  ;;  %v3271_v47 = vld [vmem:[%s4527_s5 + $0x100] sm:$0xff]  }
 0x3c4   :  { %v1839_v37 = vpop.f32.mrb[47].mxu1  ;;  %3149 = vrot.lane.b32.xlu1 %v3148_v8, %s3323_s4  ;;  %v3272_v8 = vld [vmem:[%s4527_s5 + $0x188] sm:$0xff]   ;;  %s3326_s4 = smov [#allocation2]  }
 0x3c5   :  { %v3273_v37 = vld [vmem:[%s4527_s5 + $0x108] sm:$0xff]  }
 0x416   :  { %v3130_v51 = vpop.permute.xlu1 %3129 }
 0x417   :  { %v3132_v9 = vunpack.i.h.bf16 %v3130_v51  ;;  %v3131_v53 = vunpack.i.l.bf16 %v3130_v51 }
 0x419   :  { %v1917_v36 = vsel %vm1916_vm9, %v3131_v53, %v3132_v9  ;;  %v1933_v59 = vmax.f32 %v4196_v11, %v3132_v9  ;;  %v3274_v9 = vld [vmem:[%s4527_s5 + $0x110] sm:$0xff]   ;;  %v3276_v53 = vld [vmem:[%s4527_s5 + $0x120] sm:$0xff]  }
 0x41a   :  { %v1932_v62 = vmax.f32 %v4194_v40, %v1917_v36  ;;  %v3249_v40 = vld [vmem:[%s4527_s5 + $0x8] sm:$0xff]   ;;  %v3278_v36 = vld [vmem:[%s4527_s5 + $0x130] sm:$0xff]  }
 0x41e   :  { %v3135_v34 = vpop.permute.xlu0 %3134 }
 0x41f   :  { %v3137_v54 = vunpack.i.h.bf16 %v3135_v34  ;;  %v3136_v57 = vunpack.i.l.bf16 %v3135_v34  ;;  %v3277_v34 = vld [vmem:[%s4527_s5 + $0x128] sm:$0xff]  }
 0x421   :  { %v1935_v14 = vmax.f32 %v4221_v52, %v3137_v54  ;;  %v1918_v61 = vsel %vm1916_vm9, %v3136_v57, %v3137_v54  ;;  %v3279_v54 = vld [vmem:[%s4527_s5 + $0x138] sm:$0xff]  }
 0x422   :  { %v1934_v17 = vmax.f32 %v4219_v60, %v1918_v61  ;;  %v3281_v61 = vld [vmem:[%s4529_s7 + $0x8] sm:$0xff]  }
 0x423   :  { %v1943_v55 = vpack.c.bf16 %v1935_v14, %v1933_v59  ;;  %v3280_v59 = vld [vmem:[%s4529_s7] sm:$0xff]   ;;  %v3324_v14 = vmov 0.0  }
 0x424   :  { %v4310_v63 = vpack.c.bf16 %v1934_v17, %v1932_v62  ;;  %v3283_v62 = vld [vmem:[%s4529_s7 + $0x18] sm:$0xff]   ;;  %v3284_v17 = vld [vmem:[%s4529_s7 + $0x20] sm:$0xff]  }
 0x425   :  { %v2051_v50 = vrot.slane %v1943_v55, 4 }
 0x426   :  { %v2050_v3 = vrot.slane %v4310_v63, 4  ;;  %v3140_v11 = vpop.permute.xlu1 %3139 }
 0x427   :  { %2918 = vmatprep.mubr.msk.bf16.mxu0 %vm2113_vm10, %v2051_v50  ;;  %v3142_v60 = vunpack.i.h.bf16 %v3140_v11  ;;  %v3141_v52 = vunpack.i.l.bf16 %v3140_v11  ;;  %v3287_v50 = vld [vmem:[%s4529_s7 + $0x38] sm:$0xff]  }
 0x428   :  { %2150 = vmatmul.mubr.bf16.vlgmr.msra.gmra.mrb[52].mxu0 %v2050_v3  ;;  %v3289_v3 = vld [vmem:[%s4531_s9 + $0x8] sm:$0xff]  }
 0x429   :  { %2221 = vmatpush1.bf16.msra.mxu0 %v3247_v2  ;;  %2929 = vmatprep.mubr.msk.bf16.mxu0 %vm2113_vm10, %v1943_v55  ;;  %v1919_v5 = vsel %vm1916_vm9, %v3141_v52, %v3142_v60  ;;  %v1937_v20 = vmax.f32 %v4230_v0, %v3142_v60  ;;  %v3254_v0 = vld [vmem:[%s4527_s5 + $0x140] sm:$0xff]   ;;  %v3285_v55 = vld [vmem:[%s4529_s7 + $0x28] sm:$0xff]  }
 0x42a   :  { %2222 = vmatprep.subr.bf16.mxu0 %v3320_v22  ;;  %v1936_v42 = vmax.f32 %v4228_v28, %v1919_v5  ;;  %v3288_v2 = vld [vmem:[%s4531_s9] sm:$0xff]  }
 0x42d   :  { %2223 = vmatpush1.bf16.msra.mxu0 %v3249_v40 }
 0x42e   :  { %v3145_v7 = vpop.permute.xlu0 %3144  ;;  %2224 = vmatprep.subr.bf16.mxu0 %v3320_v22 }
 0x42f   :  { %v3147_v4 = vunpack.i.h.bf16 %v3145_v7  ;;  %v3146_v13 = vunpack.i.l.bf16 %v3145_v7 }
 0x431   :  { %v1939_v39 = vmax.f32 %v4238_v18, %v3147_v4  ;;  %v1920_v15 = vsel %vm1916_vm9, %v3146_v13, %v3147_v4  ;;  %2225 = vmatpush1.bf16.msra.mxu0 %v3251_v49  ;;  %v3255_v18 = vld [vmem:[%s4527_s5 + $0x20] sm:$0xff]  }
 0x432   :  { %v1938_v41 = vmax.f32 %v4236_v16, %v1920_v15  ;;  %2226 = vmatprep.subr.bf16.mxu0 %v3320_v22  ;;  %v3256_v16 = vld [vmem:[%s4527_s5 + $0x148] sm:$0xff]  }
 0x433   :  { %v1945_v32 = vpack.c.bf16 %v1939_v39, %v1937_v20 }
 0x434   :  { %v4339_v23 = vpack.c.bf16 %v1938_v41, %v1936_v42 }
 0x435   :  { %2227 = vmatpush1.bf16.msra.mxu0 %v3253_v21  ;;  %2940 = vmatprep.mubr.msk.bf16.mxu1 %vm2113_vm10, %v1945_v32  ;;  %v2367_v10 = vrot.slane %v1945_v32, 4 }
 0x436   :  { %v3150_v6 = vpop.permute.xlu1 %3149  ;;  %2356 = vmatmul.mubr.bf16.vlgmr.msra.gmra.mrb[48].mxu1 %v4339_v23  ;;  %2228 = vmatprep.subr.bf16.mxu0 %v3320_v22  ;;  %v2366_v57 = vrot.slane %v4339_v23, 4 }
 0x437   :  { %v3152_v28 = vunpack.i.h.bf16 %v3150_v6  ;;  %2537 = vmatpush1.bf16.msra.mxu1 %v3254_v0  ;;  %v3151_v45 = vunpack.i.l.bf16 %v3150_v6 }
 0x438   :  { %2538 = vmatprep.subr.bf16.mxu1 %v3320_v22 }
 0x439   :  { %v1941_v43 = vmax.f32 %v4246_v27, %v3152_v28  ;;  %2229 = vmatpush1.bf16.msra.mxu0 %v3255_v18  ;;  %v3259_v27 = vld [vmem:[%s4527_s5 + $0x30] sm:$0xff]   ;;  %v1921_v12 = vsel %vm1916_vm9, %v3151_v45, %v3152_v28 }
 0x43a   :  { %2230 = vmatprep.subr.bf16.mxu0 %v3320_v22  ;;  %v1940_v48 = vmax.f32 %v4244_v30, %v1921_v12  ;;  %v3275_v30 = vld [vmem:[%s4527_s5 + $0x118] sm:$0xff]  }
 0x43b   :  { %v1947_v58 = vpack.c.bf16 %v1941_v43, %v1941_v43  ;;  %2539 = vmatpush1.bf16.msra.mxu1 %v3256_v16  ;;  %v2963_v16 = vld [vmem:[%s4528_s6] ss:$0 sm:$0xff] }
 0x43c   :  { %2540 = vmatprep.subr.bf16.mxu1 %v3320_v22  ;;  %v1946_v51 = vpack.c.bf16 %v1940_v48, %v1940_v48 }
 0x43d   :  { %2231 = vmatpush1.bf16.msra.mxu0 %v3257_v44  ;;  %2962 = vmatprep.mubr.msk.bf16.mxu1 %vm2113_vm10, %v1947_v58 }
 0x43e   :  { %2232 = vmatprep.subr.bf16.mxu0 %v3320_v22 }
 0x43f   :  { %2541 = vmatpush1.bf16.msra.mxu1 %v3258_v38 }
 0x440   :  { %2542 = vmatprep.subr.bf16.mxu1 %v3320_v22 }
 0x441   :  { %2233 = vmatpush1.bf16.msra.mxu0 %v3259_v27 }
 0x442   :  { %2234 = vmatprep.subr.bf16.mxu0 %v3320_v22 }
 0x443   :  { %2543 = vmatpush1.bf16.msra.mxu1 %v3260_v56 }
 0x444   :  { %2544 = vmatprep.subr.bf16.mxu1 %v3320_v22 }
 0x445   :  { %2235 = vmatpush1.bf16.msra.mxu0 %v3261_v1  ;;  %v3290_v1 = vld [vmem:[%s4531_s9 + $0x10] sm:$0xff]  }
 0x446   :  { %2236 = vmatprep.subr.bf16.mxu0 %v3320_v22 }
 0x447   :  { %2545 = vmatpush1.bf16.msra.mxu1 %v3262_v29  ;;  %v3291_v29 = vld [vmem:[%s4531_s9 + $0x18] sm:$0xff]   ;;  %s2789_s9 = sshll.u32 %s3326_s4, 4  ;;  %s2790_s9 = int_to_ptr.vmem [resolvable:$true] %s2789_s9 }
 0x448   :  { %2546 = vmatprep.subr.bf16.mxu1 %v3320_v22  ;;  %p3297_p1 = scmp.lt.s32.totalorder %s2790_s9, %s2790_s9 }
 0x449   :  { %2237 = vmatpush1.bf16.msra.mxu0 %v3263_v25  ;;  %v2964_v25 = vld [vmem:[%s4530_s8] ss:$0 sm:$0xff]  ;;  %s3292_s8 = scalar_lea.vmem %s2790_s9, 128 }
 0x44a   :  { %2238 = vmatprep.subr.bf16.mxu0 %v3320_v22  ;;  %p3293_p0 = scmp.ne.s32.totalorder %s2790_s9, %s3292_s8  ;;  %p3298_p2 = scmp.lt.s32.totalorder %s3292_s8, %s3292_s8 }
 0x44b   :  { %2547 = vmatpush1.bf16.msra.mxu1 %v3264_v24 }
 0x44c   :  { %2548 = vmatprep.subr.bf16.mxu1 %v3320_v22  ;;  %p3299_p3 = por %p3298_p2, %p3297_p1 }
 0x44d   :  { %2239 = vmatpush1.bf16.msra.mxu0 %v3265_v31 }
 0x44e   :  { %2432 = vmatprep.subr.bf16.mxu0 %v3320_v22  ;;  %p3300_p4 = pnand %p3299_p3, %p3293_p0 }
 0x44f   :  { %2549 = vmatpush1.bf16.msra.mxu1 %v3266_v33 }
 0x450   :  { %2253 = vmatmul.mubr.bf16.vlgmr.msra.gmra.mrb[56].mxu0 %v4310_v63  ;;  %2550 = vmatprep.subr.bf16.mxu1 %v3320_v22  ;;  %v3286_v63 = vld [vmem:[%s4529_s7 + $0x30] sm:$0xff]  }
 0x451   :  { %2433 = vmatpush1.bf16.msra.mxu0 %v3267_v35  ;;  %2951 = vmatprep.mubr.msk.bf16.mxu0 %vm2113_vm10, %v2367_v10 }
 0x452   :  { %2434 = vmatprep.subr.bf16.mxu0 %v3320_v22 }
 0x453   :  { %2551 = vmatpush1.bf16.msra.mxu1 %v3268_v19 }
 0x454   :  { %2552 = vmatprep.subr.bf16.mxu1 %v3320_v22 }
 0x455   :  { %2435 = vmatpush1.bf16.msra.mxu0 %v3269_v46  ;;  %v2973_v46 = vld [vmem:[%s4532_s10] ss:$0 sm:$0xff] }
 0x456   :  { %2436 = vmatprep.subr.bf16.mxu0 %v3320_v22 }
 0x457   :  { %2553 = vmatpush1.bf16.msra.mxu1 %v3270_v26 }
 0x458   :  { %2554 = vmatprep.subr.bf16.mxu1 %v3320_v22 }
 0x459   :  { %2437 = vmatpush1.bf16.msra.mxu0 %v3271_v47 }
 0x45a   :  { %2438 = vmatprep.subr.bf16.mxu0 %v3320_v22 }
 0x45b   :  { %2555 = vmatpush1.bf16.msra.mxu1 %v3272_v8 }
 0x45c   :  { %3040 = vmatprep.subr.bf16.mxu1 %v3324_v14 }
 0x45d   :  { %2439 = vmatpush1.bf16.msra.mxu0 %v3273_v37 }
 0x45e   :  { %2569 = vmatmul.mubr.bf16.vlgmr.msra.gmra.mrb[52].mxu1 %v1946_v51  ;;  %2440 = vmatprep.subr.bf16.mxu0 %v3320_v22 }
 0x45f   :  { %3048 = vmatprep.mubr.msk.bf16.mxu1 %vm3325_vm11, %v3324_v14  ;;  %3041 = vmatpush3.bf16.msra.mxu1 %v3288_v2 }
 0x460   :  { %3042 = vmatprep.subr.bf16.mxu1 %v3324_v14 }
 0x461   :  { %2441 = vmatpush1.bf16.msra.mxu0 %v3274_v9 }
 0x462   :  { %2442 = vmatprep.subr.bf16.mxu0 %v3320_v22 }
 0x463   :  { %3043 = vmatpush3.bf16.msra.mxu1 %v3289_v3 }
 0x464   :  { %3044 = vmatprep.subr.bf16.mxu1 %v3324_v14 }
 0x465   :  { %2443 = vmatpush1.bf16.msra.mxu0 %v3275_v30 }
 0x466   :  { %2444 = vmatprep.subr.bf16.mxu0 %v3320_v22 }
 0x467   :  { %3045 = vmatpush3.bf16.msra.mxu1 %v3290_v1 }
 0x468   :  { %3046 = vmatprep.subr.bf16.mxu1 %v3324_v14 }
 0x469   :  { %2445 = vmatpush1.bf16.msra.mxu0 %v3276_v53 }
 0x46a   :  { %2446 = vmatprep.subr.bf16.mxu0 %v3320_v22 }
 0x46b   :  { %3047 = vmatpush3.bf16.msra.mxu1 %v3291_v29 }
 0x46d   :  { %2447 = vmatpush1.bf16.msra.mxu0 %v3277_v34 }
 0x46e   :  { %2448 = vmatprep.subr.bf16.mxu0 %v3320_v22 }
 0x471   :  { %2449 = vmatpush1.bf16.msra.mxu0 %v3278_v36 }
 0x472   :  { %2450 = vmatprep.subr.bf16.mxu0 %v3320_v22  ;;  %v3282_v22 = vld [vmem:[%s4529_s7 + $0x10] sm:$0xff]  }
 0x475   :  { %2451 = vmatpush1.bf16.msra.mxu0 %v3279_v54 }
 0x476   :  { %3020 = vmatprep.subr.bf16.mxu0 %v3324_v14 }
 0x478   :  { %2465 = vmatmul.mubr.bf16.vlgmr.msra.gmra.mrb[60].mxu0 %v2366_v57 }
 0x479   :  { %3021 = vmatpush3.bf16.msra.mxu0 %v3280_v59  ;;  %3036 = vmatprep.mubr.msk.bf16.mxu0 %vm3325_vm11, %v3324_v14 }
 0x47a   :  { %3022 = vmatprep.subr.bf16.mxu0 %v3324_v14 }
 0x47d   :  { %3023 = vmatpush3.bf16.msra.mxu0 %v3281_v61 }
 0x47e   :  { %3024 = vmatprep.subr.bf16.mxu0 %v3324_v14 }
 0x481   :  { %3025 = vmatpush3.bf16.msra.mxu0 %v3282_v22 }
 0x482   :  { %3026 = vmatprep.subr.bf16.mxu0 %v3324_v14 }
 0x485   :  { %3027 = vmatpush3.bf16.msra.mxu0 %v3283_v62 }
 0x486   :  { %3028 = vmatprep.subr.bf16.mxu0 %v3324_v14 }
 0x489   :  { %3029 = vmatpush3.bf16.msra.mxu0 %v3284_v17 }
 0x48a   :  { %3030 = vmatprep.subr.bf16.mxu0 %v3324_v14 }
 0x48d   :  { %3031 = vmatpush3.bf16.msra.mxu0 %v3285_v55 }
 0x48e   :  { %3032 = vmatprep.subr.bf16.mxu0 %v3324_v14 }
 0x491   :  { %3033 = vmatpush3.bf16.msra.mxu0 %v3286_v63 }
 0x492   :  { %3034 = vmatprep.subr.bf16.mxu0 %v3324_v14 }
 0x495   :  { %3035 = vmatpush3.bf16.msra.mxu0 %v3287_v50 }
 0x4fb   :  { %v2151_v11 = vpop.f32.mrb[52].mxu0 }
 0x4fc   :  { %v2153_v40 = vpop.f32.mrb[53].mxu0 }
 0x4fd   :  { %v2154_v60 = vpop.f32.mrb[54].mxu0 }
 0x4fe   :  { %v2155_v52 = vpop.f32.mrb[55].mxu0 }
 0x509   :  { %v2357_v49 = vpop.f32.mrb[48].mxu1 }
 0x50a   :  { %v2359_v7 = vpop.f32.mrb[49].mxu1 }
 0x50b   :  { %v2360_v5 = vpop.f32.mrb[50].mxu1 }
 0x50c   :  { %v2361_v4 = vpop.f32.mrb[51].mxu1 }
 0x523   :  { %v2254_v13 = vpop.f32.mrb[56].mxu0 }
 0x524   :  { %v2255_v20 = vadd.f32 %v2254_v13, %v2151_v11  ;;  %v2256_v39 = vpop.f32.mrb[57].mxu0 }
 0x525   :  { %v2257_v15 = vpop.f32.mrb[58].mxu0 }
 0x526   :  { %v2258_v21 = vpop.f32.mrb[59].mxu0  ;;  %v2363_v42 = vadd.f32 %v2357_v49, %v2255_v20 }
 0x531   :  { %v2570_v41 = vpop.f32.mrb[52].mxu1 }
 0x532   :  { %v2572_v32 = vpop.f32.mrb[53].mxu1 }
 0x533   :  { %v2573_v0 = vpop.f32.mrb[54].mxu1 }
 0x534   :  { %v2574_v23 = vpop.f32.mrb[55].mxu1 }
 0x54b   :  { %v2466_v18 = vpop.f32.mrb[60].mxu0 }
 0x54c   :  { %v2472_v6 = vadd.f32 %v2466_v18, %v2363_v42  ;;  %v2468_v28 = vpop.f32.mrb[61].mxu0 }
 0x54d   :  { %v2469_v43 = vpop.f32.mrb[62].mxu0 }
 0x54e   :  { %v2576_v44 = vadd.f32 %v2570_v41, %v2472_v6  ;;  %v2470_v58 = vpop.f32.mrb[63].mxu0 }
 0x550   :  { %v2584_v38 = vadd.f32 %v2963_v16, %v2576_v44 }
 0x552   :  { %v2585_v27 = vmax.f32 %v2584_v38, 0.0 }
 0x554   :  { %v2586_v56 = vpack.c.bf16 %v2585_v27, %v2585_v27 }
 0x556   :  { %3037 = vmatmul.mubr.bf16.vlgmr.msra.gmra.mrb[64].mxu0 %v2586_v56 }
 0x629   :  { %v2692_v24 = vpop.f32.mrb[64].mxu0 }
 0x62a   :  { %v2693_v31 = vadd.f32 %v2964_v25, %v2692_v24  ;;  %v3038_v33 = vpop.f32.mrb[65].mxu0 }
 0x62b   :  { %v2695_v35 = vpop.f32.mrb[66].mxu0 }
 0x62c   :  { %v2698_v10 = vmax.f32 %v2693_v31, 0.0  ;;  %v3039_v19 = vpop.f32.mrb[67].mxu0 }
 0x62e   :  { %v2699_v45 = vpack.c.bf16 %v2698_v10, %v2698_v10 }
 0x630   :  { %3049 = vmatmul.mubr.msk.bf16.vlgmr.msra.gmra.mrb[56].mxu1 %vm1916_vm9, %v2699_v45 }
 0x703   :  { %v2776_v26 = vpop.f32.mrb[56].mxu1 }
 0x704   :  { %v2777_v12 = vadd.f32 %v2973_v46, %v2776_v26  ;;  %v3050_v47 = vpop.f32.mrb[57].mxu1 }
 0x705   :  { %v2779_v8 = vpop.f32.mrb[58].mxu1 }
 0x706   :  { %2782 = vst [vmem:[#allocation2] sm:$0xff] %v2777_v12  ;;  %v3051_v48 = vpop.f32.mrb[59].mxu1 }
 0x707   :  { %3303 = shalt.err (!%p3300_p4)
}
 0x708   :  { %s3304_s10 = scalar_lea.hbm %s4533_s11, 128 }
 0x709   :  { %p3305_p5 = scmp.ne.s32.totalorder %s4533_s11, %s3304_s10  ;;  %p3308_p6 = scmp.lt.u32.totalorder %s3304_s10, %s4533_s11 }
 0x70b   :  { %p3310_p7 = pnand %p3308_p6, %p3305_p5 }
 0x70d   :  { %3313 = shalt.err (!%p3310_p7)
}
 0x70e   :  { %2792 = dma.vmem_to_hbm [thread:$0]  %s2790_s9, 128, %s4533_s11, [#allocation3]  }
 0x70f   :  { %3314 = dma.done.wait [#allocation3], 128  }
 0x710   :  { %3315 = vsyncadd [#allocation3], 4294967168 }
 0x711   :  { %2796 = vsyncpa [#allocation3], 1 }

</bundles_post_ra>
